<compile_context>
chip_gen: v5e
topology: v5e:2x2
jax: 0.10.0
libtpu: 0.0.40
codegen_flags: <defaults>
</compile_context>

<pallas_src>
import math
import numpy as np
import jax
import jax.numpy as jnp
from jax import lax
from jax.experimental import pallas as pl
from jax.experimental.pallas import tpu as pltpu


# ----------------------------------------------------------------------------
# Fused forward
# ----------------------------------------------------------------------------
def multi_headed_attention(params, query, key, value, h):
    """query/key/value: (N, d_model, L) f32 (Conv1d NCL).  Returns (N, d_model, L)."""
    N, C, L = query.shape
    assert C % h == 0
    d_k = C // h
    # The flat PyTorch `.view(n, -1, h, d_k)` of the (N, C, L) conv output is
    # folded into a row permutation of the conv weights; that folding requires:
    assert C % L == 0 and L % d_k == 0, (
        "fused kernel requires d_model % seq_len == 0 and seq_len % d_k == 0")
    # TODO(synk): general (d_model, L) combinations need an in-kernel gather.
    r = C // L
    Ka = 3 * C + 8            # im2col K: 3 taps * C channels + 8 bias/pad rows

    # ------------------------------------------------------------------
    # One-time parameter prep (tiny): Conv1d weight (C_out, C_in, 3) ->
    # (C_out, 3*C_in) tap-major to match the im2col rows, bias appended as a
    # column (ones-row trick) plus 7 zero columns for 8-row alignment.
    # Q/K/V weights additionally get their OUTPUT channels (rows) permuted so
    # that head `hh` becomes the contiguous block
    #   ys[m*L : (m+1)*L, l0 : l0+d_k],  m = (hh*d_k)//L, l0 = (hh*d_k)%L,
    # exactly reproducing PyTorch's .view(...).transpose(1, 2) semantics.
    # ------------------------------------------------------------------
    perm = (np.arange(L)[None, :] * r + np.arange(r)[:, None]).reshape(-1)

    def prep_weight(w, b, permute_rows):
        wr = jnp.transpose(w, (0, 2, 1)).reshape(C, 3 * C)          # [o, k*C + i]
        waug = jnp.concatenate(
            [wr, b[:, None], jnp.zeros((C, Ka - 3 * C - 1), jnp.float32)], axis=1)
        return waug[perm, :] if permute_rows else waug

    w_all = jnp.stack(
        [prep_weight(params["w"][j], params["b"][j], j < 3) for j in range(4)])

    inv_sqrt_dk = 1.0 / math.sqrt(d_k)

    def kernel(xq_ref, xk_ref, xv_ref, w_ref, o_ref, xpad, acol, omerge):
        f32 = jnp.float32

        # ---- per-step scratch setup (boundary pad columns + bias rows) ----
        xpad[:, 0:1] = jnp.zeros((C, 1), f32)             # left pad column
        xpad[:, L + 1:L + 2] = jnp.zeros((C, 1), f32)     # right pad column
        rid = lax.broadcasted_iota(jnp.int32, (8, L), 0)
        acol[3 * C:Ka, :] = jnp.where(rid == 0, 1.0, 0.0).astype(f32)

        def conv(x, j):
            """Conv1d(k=3, pad=1) + bias as one (C, Ka) @ (Ka, L) MXU matmul."""
            xpad[:, 1:L + 1] = x
            acol[0:C, :] = xpad[:, 0:L]               # tap 0 -> x[:, l-1]
            acol[C:2 * C, :] = x                      # tap 1 -> x[:, l]
            acol[2 * C:3 * C, :] = xpad[:, 2:L + 2]   # tap 2 -> x[:, l+1]
            return jnp.dot(w_ref[j], acol[...], preferred_element_type=f32)

        # ---- Q/K/V projections (weights pre-permuted -> heads are slices) --
        ys_q = conv(xq_ref[0], 0)
        ys_k = conv(xk_ref[0], 1)
        ys_v = conv(xv_ref[0], 2)

        # ---- per-head scaled dot-product attention (all in VMEM) -----------
        # TODO(synk): mask path and training-mode dropout are not implemented
        # (forward corresponds to mask=None, dropout in eval/identity mode).
        for hh in range(h):
            m = (hh * d_k) // L
            l0 = (hh * d_k) % L
            rs = slice(m * L, (m + 1) * L)
            cs = slice(l0, l0 + d_k)
            q_h = ys_q[rs, cs] * inv_sqrt_dk          # scale folded into Q
            k_h = ys_k[rs, cs]
            v_h = ys_v[rs, cs]
            s = lax.dot_general(q_h, k_h, (((1,), (1,)), ((), ())),
                                preferred_element_type=f32)         # (L, L)
            e = jnp.exp(s - jnp.max(s, axis=-1, keepdims=True))
            p = e * pl.reciprocal(jnp.sum(e, axis=-1, keepdims=True), approx=True)
            omerge[:, hh * d_k:(hh + 1) * d_k] = jnp.dot(
                p, v_h, preferred_element_type=f32)                 # (L, d_k)

        # ---- head merge back to NCL: z (C, L) = omerge^T, computed on the
        #      MXU via an identity "nt" matmul (avoids an XLU transpose). -----
        i0 = lax.broadcasted_iota(jnp.int32, (C, C), 0)
        i1 = lax.broadcasted_iota(jnp.int32, (C, C), 1)
        eye = jnp.where(i0 == i1, 1.0, 0.0).astype(f32)
        z = lax.dot_general(eye, omerge[...], (((1,), (1,)), ((), ())),
                            preferred_element_type=f32)             # (C, L)

        # ---- output projection ---------------------------------------------
        o_ref[0] = conv(z, 3)

    return pl.pallas_call(
        kernel,
        out_shape=jax.ShapeDtypeStruct((N, C, L), jnp.float32),
        grid=(N,),
        in_specs=[
            pl.BlockSpec((1, C, L), lambda n: (n, 0, 0)),
            pl.BlockSpec((1, C, L), lambda n: (n, 0, 0)),
            pl.BlockSpec((1, C, L), lambda n: (n, 0, 0)),
            pl.BlockSpec((4, C, Ka), lambda n: (0, 0, 0)),
        ],
        out_specs=pl.BlockSpec((1, C, L), lambda n: (n, 0, 0)),
        scratch_shapes=[
            pltpu.VMEM((C, L + 2), jnp.float32),   # padded activation
            pltpu.VMEM((Ka, L), jnp.float32),      # im2col (+ bias rows)
            pltpu.VMEM((L, C), jnp.float32),       # head-merged attention out
        ],
        compiler_params=pltpu.CompilerParams(
            dimension_semantics=("parallel",)),    # N >= 2 -> both TCs on v7x
    )(query, key, value, w_all)


# ----------------------------------------------------------------------------
# Pure-JAX reference (for correctness check)
# ----------------------------------------------------------------------------
def _conv_ref(x, w, b):
    y = lax.conv_general_dilated(x, w, window_strides=(1,), padding=[(1, 1)],
                                 dimension_numbers=("NCH", "OIH", "NCH"))
    return y + b[None, :, None]


def _mha_ref(params, query, key, value, h):
    N, d_model, L = query.shape
    d_k = d_model // h

    def proj(x, i):
        y = _conv_ref(x, params["w"][i], params["b"][i])
        return jnp.transpose(y.reshape(N, L, h, d_k), (0, 2, 1, 3))

    q, k, v = proj(query, 0), proj(key, 1), proj(value, 2)
    scores = jnp.einsum("nhqd,nhkd->nhqk", q, k) / math.sqrt(d_k)
    p = jax.nn.softmax(scores, axis=-1)
    x = jnp.einsum("nhqk,nhkd->nhqd", p, v)
    x = jnp.transpose(x, (0, 2, 1, 3)).reshape(N, L, d_model)
    x = jnp.transpose(x, (0, 2, 1))
    return _conv_ref(x, params["w"][3], params["b"][3])


if __name__ == "__main__":
    # Small shapes: batch=2, d_model=32, heads=4 (d_k=8), seq=16
    N, d_model, h, L = 2, 32, 4, 16

    key0 = jax.random.PRNGKey(0)
    keys = jax.random.split(key0, 11)

    # Deterministic parameter init: 4 Conv1d(d_model, d_model, k=3) layers.
    scale = 1.0 / math.sqrt(d_model * 3)
    params = {
        "w": [scale * jax.random.normal(keys[i], (d_model, d_model, 3),
                                        dtype=jnp.float32) for i in range(4)],
        "b": [scale * jax.random.normal(keys[4 + i], (d_model,),
                                        dtype=jnp.float32) for i in range(4)],
    }

    query = jax.random.normal(keys[8], (N, d_model, L), dtype=jnp.float32)
    key_t = jax.random.normal(keys[9], (N, d_model, L), dtype=jnp.float32)
    value = jax.random.normal(keys[10], (N, d_model, L), dtype=jnp.float32)

    out = multi_headed_attention(params, query, key_t, value, h)
    out = jax.block_until_ready(out)

    ref = _mha_ref(params, query, key_t, value, h)
    assert out.shape == (N, d_model, L)
    # 2e-3 tolerance: the softmax normalisation uses the EUP approximate
    # reciprocal (pl.reciprocal(approx=True)); everything else is f32-exact.
    assert jnp.allclose(out, ref, atol=2e-3, rtol=2e-3), "mismatch vs reference"

    print("KERNEL_OK")
</pallas_src>

<mosaic_0001>
module attributes {stable_mosaic.version = 11 : i64} {
  func.func @kernel(%arg0: i32, %arg1: memref<1x32x16xf32, #tpu.memory_space<vmem>>, %arg2: memref<1x32x16xf32, #tpu.memory_space<vmem>>, %arg3: memref<1x32x16xf32, #tpu.memory_space<vmem>>, %arg4: memref<4x32x104xf32, #tpu.memory_space<vmem>>, %arg5: memref<1x32x16xf32, #tpu.memory_space<vmem>>, %arg6: memref<32x18xf32, #tpu.memory_space<vmem>>, %arg7: memref<104x16xf32, #tpu.memory_space<vmem>>, %arg8: memref<16x32xf32, #tpu.memory_space<vmem>>) attributes {dimension_semantics = [#tpu.dimension_semantics<parallel>], iteration_bounds = array<i64: 2>, scalar_prefetch = 0 : i64, scratch_operands = 3 : i64, tpu.core_type = #tpu.core_type<tc>, window_params = [{transform_indices = @transform_0, window_bounds = array<i64: 1, 32, 16>}, {transform_indices = @transform_1, window_bounds = array<i64: 1, 32, 16>}, {transform_indices = @transform_2, window_bounds = array<i64: 1, 32, 16>}, {pipeline_mode = #tpu.pipeline_mode<synchronous>, transform_indices = @transform_3, window_bounds = array<i64: 4, 32, 104>}, {transform_indices = @transform_4, window_bounds = array<i64: 1, 32, 16>}]} {
    %cst = arith.constant 0.000000e+00 : f32
    %0 = vector.broadcast %cst : f32 to vector<32x1xf32>
    %c0 = arith.constant 0 : index
    %c0_0 = arith.constant 0 : index
    %1 = vector.load %arg6[%c0, %c0_0] : memref<32x18xf32, #tpu.memory_space<vmem>>, vector<32x1xf32>
    tpu.vector_store %arg6[%c0, %c0_0], %0 {strides = array<i32>} : memref<32x18xf32, #tpu.memory_space<vmem>>, vector<32x1xf32>,
    %cst_1 = arith.constant 0.000000e+00 : f32
    %2 = vector.broadcast %cst_1 : f32 to vector<32x1xf32>
    %c0_2 = arith.constant 0 : index
    %c17 = arith.constant 17 : index
    %3 = vector.load %arg6[%c0_2, %c17] : memref<32x18xf32, #tpu.memory_space<vmem>>, vector<32x1xf32>
    tpu.vector_store %arg6[%c0_2, %c17], %2 {strides = array<i32>} : memref<32x18xf32, #tpu.memory_space<vmem>>, vector<32x1xf32>,
    %4 = tpu.iota {dimensions = array<i32: 0>} : vector<8x16xi32>
    %c0_i32 = arith.constant 0 : i32
    %5 = vector.broadcast %c0_i32 : i32 to vector<8x16xi32>
    %6 = arith.cmpi eq, %4, %5 : vector<8x16xi32>
    %cst_3 = arith.constant 1.000000e+00 : f32
    %cst_4 = arith.constant 0.000000e+00 : f32
    %7 = vector.broadcast %cst_3 : f32 to vector<8x16xf32>
    %8 = vector.broadcast %cst_4 : f32 to vector<8x16xf32>
    %9 = arith.select %6, %7, %8 : vector<8x16xi1>, vector<8x16xf32>
    %c96 = arith.constant 96 : index
    %c0_5 = arith.constant 0 : index
    %10 = vector.load %arg7[%c96, %c0_5] : memref<104x16xf32, #tpu.memory_space<vmem>>, vector<8x16xf32>
    tpu.vector_store %arg7[%c96, %c0_5], %9 {strides = array<i32>} : memref<104x16xf32, #tpu.memory_space<vmem>>, vector<8x16xf32>,
    %c0_6 = arith.constant 0 : index
    %c0_7 = arith.constant 0 : index
    %c0_8 = arith.constant 0 : index
    %11 = vector.load %arg1[%c0_6, %c0_7, %c0_8] : memref<1x32x16xf32, #tpu.memory_space<vmem>>, vector<1x32x16xf32>
    %12 = vector.shape_cast %11 : vector<1x32x16xf32> to vector<32x16xf32>
    %c0_9 = arith.constant 0 : index
    %c1 = arith.constant 1 : index
    %13 = vector.load %arg6[%c0_9, %c1] : memref<32x18xf32, #tpu.memory_space<vmem>>, vector<32x16xf32>
    tpu.vector_store %arg6[%c0_9, %c1], %12 {strides = array<i32>} : memref<32x18xf32, #tpu.memory_space<vmem>>, vector<32x16xf32>,
    %c0_10 = arith.constant 0 : index
    %c0_11 = arith.constant 0 : index
    %14 = vector.load %arg6[%c0_10, %c0_11] : memref<32x18xf32, #tpu.memory_space<vmem>>, vector<32x16xf32>
    %c0_12 = arith.constant 0 : index
    %c0_13 = arith.constant 0 : index
    %15 = vector.load %arg7[%c0_12, %c0_13] : memref<104x16xf32, #tpu.memory_space<vmem>>, vector<32x16xf32>
    tpu.vector_store %arg7[%c0_12, %c0_13], %14 {strides = array<i32>} : memref<104x16xf32, #tpu.memory_space<vmem>>, vector<32x16xf32>,
    %c32 = arith.constant 32 : index
    %c0_14 = arith.constant 0 : index
    %16 = vector.load %arg7[%c32, %c0_14] : memref<104x16xf32, #tpu.memory_space<vmem>>, vector<32x16xf32>
    tpu.vector_store %arg7[%c32, %c0_14], %12 {strides = array<i32>} : memref<104x16xf32, #tpu.memory_space<vmem>>, vector<32x16xf32>,
    %c0_15 = arith.constant 0 : index
    %c2 = arith.constant 2 : index
    %17 = vector.load %arg6[%c0_15, %c2] : memref<32x18xf32, #tpu.memory_space<vmem>>, vector<32x16xf32>
    %c64 = arith.constant 64 : index
    %c0_16 = arith.constant 0 : index
    %18 = vector.load %arg7[%c64, %c0_16] : memref<104x16xf32, #tpu.memory_space<vmem>>, vector<32x16xf32>
    tpu.vector_store %arg7[%c64, %c0_16], %17 {strides = array<i32>} : memref<104x16xf32, #tpu.memory_space<vmem>>, vector<32x16xf32>,
    %c0_17 = arith.constant 0 : index
    %c0_18 = arith.constant 0 : index
    %c0_19 = arith.constant 0 : index
    %19 = vector.load %arg4[%c0_17, %c0_18, %c0_19] : memref<4x32x104xf32, #tpu.memory_space<vmem>>, vector<1x32x104xf32>
    %20 = vector.shape_cast %19 : vector<1x32x104xf32> to vector<32x104xf32>
    %c0_20 = arith.constant 0 : index
    %c0_21 = arith.constant 0 : index
    %21 = vector.load %arg7[%c0_20, %c0_21] : memref<104x16xf32, #tpu.memory_space<vmem>>, vector<104x16xf32>
    %cst_22 = arith.constant dense<0.000000e+00> : vector<32x16xf32>
    %22 = tpu.matmul %20, %21, %cst_22 {dimension_numbers = #tpu.dot_dimension_numbers<[1], [0], [0], [1], [0, 0, 1, 1], [], []>} : vector<32x104xf32>, vector<104x16xf32>, vector<32x16xf32> -> vector<32x16xf32>
    %c0_23 = arith.constant 0 : index
    %c0_24 = arith.constant 0 : index
    %c0_25 = arith.constant 0 : index
    %23 = vector.load %arg2[%c0_23, %c0_24, %c0_25] : memref<1x32x16xf32, #tpu.memory_space<vmem>>, vector<1x32x16xf32>
    %24 = vector.shape_cast %23 : vector<1x32x16xf32> to vector<32x16xf32>
    %c0_26 = arith.constant 0 : index
    %c1_27 = arith.constant 1 : index
    %25 = vector.load %arg6[%c0_26, %c1_27] : memref<32x18xf32, #tpu.memory_space<vmem>>, vector<32x16xf32>
    tpu.vector_store %arg6[%c0_26, %c1_27], %24 {strides = array<i32>} : memref<32x18xf32, #tpu.memory_space<vmem>>, vector<32x16xf32>,
    %c0_28 = arith.constant 0 : index
    %c0_29 = arith.constant 0 : index
    %26 = vector.load %arg6[%c0_28, %c0_29] : memref<32x18xf32, #tpu.memory_space<vmem>>, vector<32x16xf32>
    %c0_30 = arith.constant 0 : index
    %c0_31 = arith.constant 0 : index
    %27 = vector.load %arg7[%c0_30, %c0_31] : memref<104x16xf32, #tpu.memory_space<vmem>>, vector<32x16xf32>
    tpu.vector_store %arg7[%c0_30, %c0_31], %26 {strides = array<i32>} : memref<104x16xf32, #tpu.memory_space<vmem>>, vector<32x16xf32>,
    %c32_32 = arith.constant 32 : index
    %c0_33 = arith.constant 0 : index
    %28 = vector.load %arg7[%c32_32, %c0_33] : memref<104x16xf32, #tpu.memory_space<vmem>>, vector<32x16xf32>
    tpu.vector_store %arg7[%c32_32, %c0_33], %24 {strides = array<i32>} : memref<104x16xf32, #tpu.memory_space<vmem>>, vector<32x16xf32>,
    %c0_34 = arith.constant 0 : index
    %c2_35 = arith.constant 2 : index
    %29 = vector.load %arg6[%c0_34, %c2_35] : memref<32x18xf32, #tpu.memory_space<vmem>>, vector<32x16xf32>
    %c64_36 = arith.constant 64 : index
    %c0_37 = arith.constant 0 : index
    %30 = vector.load %arg7[%c64_36, %c0_37] : memref<104x16xf32, #tpu.memory_space<vmem>>, vector<32x16xf32>
    tpu.vector_store %arg7[%c64_36, %c0_37], %29 {strides = array<i32>} : memref<104x16xf32, #tpu.memory_space<vmem>>, vector<32x16xf32>,
    %c1_38 = arith.constant 1 : index
    %c0_39 = arith.constant 0 : index
    %c0_40 = arith.constant 0 : index
    %31 = vector.load %arg4[%c1_38, %c0_39, %c0_40] : memref<4x32x104xf32, #tpu.memory_space<vmem>>, vector<1x32x104xf32>
    %32 = vector.shape_cast %31 : vector<1x32x104xf32> to vector<32x104xf32>
    %c0_41 = arith.constant 0 : index
    %c0_42 = arith.constant 0 : index
    %33 = vector.load %arg7[%c0_41, %c0_42] : memref<104x16xf32, #tpu.memory_space<vmem>>, vector<104x16xf32>
    %cst_43 = arith.constant dense<0.000000e+00> : vector<32x16xf32>
    %34 = tpu.matmul %32, %33, %cst_43 {dimension_numbers = #tpu.dot_dimension_numbers<[1], [0], [0], [1], [0, 0, 1, 1], [], []>} : vector<32x104xf32>, vector<104x16xf32>, vector<32x16xf32> -> vector<32x16xf32>
    %c0_44 = arith.constant 0 : index
    %c0_45 = arith.constant 0 : index
    %c0_46 = arith.constant 0 : index
    %35 = vector.load %arg3[%c0_44, %c0_45, %c0_46] : memref<1x32x16xf32, #tpu.memory_space<vmem>>, vector<1x32x16xf32>
    %36 = vector.shape_cast %35 : vector<1x32x16xf32> to vector<32x16xf32>
    %c0_47 = arith.constant 0 : index
    %c1_48 = arith.constant 1 : index
    %37 = vector.load %arg6[%c0_47, %c1_48] : memref<32x18xf32, #tpu.memory_space<vmem>>, vector<32x16xf32>
    tpu.vector_store %arg6[%c0_47, %c1_48], %36 {strides = array<i32>} : memref<32x18xf32, #tpu.memory_space<vmem>>, vector<32x16xf32>,
    %c0_49 = arith.constant 0 : index
    %c0_50 = arith.constant 0 : index
    %38 = vector.load %arg6[%c0_49, %c0_50] : memref<32x18xf32, #tpu.memory_space<vmem>>, vector<32x16xf32>
    %c0_51 = arith.constant 0 : index
    %c0_52 = arith.constant 0 : index
    %39 = vector.load %arg7[%c0_51, %c0_52] : memref<104x16xf32, #tpu.memory_space<vmem>>, vector<32x16xf32>
    tpu.vector_store %arg7[%c0_51, %c0_52], %38 {strides = array<i32>} : memref<104x16xf32, #tpu.memory_space<vmem>>, vector<32x16xf32>,
    %c32_53 = arith.constant 32 : index
    %c0_54 = arith.constant 0 : index
    %40 = vector.load %arg7[%c32_53, %c0_54] : memref<104x16xf32, #tpu.memory_space<vmem>>, vector<32x16xf32>
    tpu.vector_store %arg7[%c32_53, %c0_54], %36 {strides = array<i32>} : memref<104x16xf32, #tpu.memory_space<vmem>>, vector<32x16xf32>,
    %c0_55 = arith.constant 0 : index
    %c2_56 = arith.constant 2 : index
    %41 = vector.load %arg6[%c0_55, %c2_56] : memref<32x18xf32, #tpu.memory_space<vmem>>, vector<32x16xf32>
    %c64_57 = arith.constant 64 : index
    %c0_58 = arith.constant 0 : index
    %42 = vector.load %arg7[%c64_57, %c0_58] : memref<104x16xf32, #tpu.memory_space<vmem>>, vector<32x16xf32>
    tpu.vector_store %arg7[%c64_57, %c0_58], %41 {strides = array<i32>} : memref<104x16xf32, #tpu.memory_space<vmem>>, vector<32x16xf32>,
    %c2_59 = arith.constant 2 : index
    %c0_60 = arith.constant 0 : index
    %c0_61 = arith.constant 0 : index
    %43 = vector.load %arg4[%c2_59, %c0_60, %c0_61] : memref<4x32x104xf32, #tpu.memory_space<vmem>>, vector<1x32x104xf32>
    %44 = vector.shape_cast %43 : vector<1x32x104xf32> to vector<32x104xf32>
    %c0_62 = arith.constant 0 : index
    %c0_63 = arith.constant 0 : index
    %45 = vector.load %arg7[%c0_62, %c0_63] : memref<104x16xf32, #tpu.memory_space<vmem>>, vector<104x16xf32>
    %cst_64 = arith.constant dense<0.000000e+00> : vector<32x16xf32>
    %46 = tpu.matmul %44, %45, %cst_64 {dimension_numbers = #tpu.dot_dimension_numbers<[1], [0], [0], [1], [0, 0, 1, 1], [], []>} : vector<32x104xf32>, vector<104x16xf32>, vector<32x16xf32> -> vector<32x16xf32>
    %47 = vector.extract_strided_slice %22 {offsets = [0, 0], sizes = [16, 8], strides = [1, 1]} : vector<32x16xf32> to vector<16x8xf32>
    %cst_65 = arith.constant 0.353553385 : f32
    %48 = vector.broadcast %cst_65 : f32 to vector<16x8xf32>
    %49 = arith.mulf %47, %48 : vector<16x8xf32>
    %50 = vector.extract_strided_slice %34 {offsets = [0, 0], sizes = [16, 8], strides = [1, 1]} : vector<32x16xf32> to vector<16x8xf32>
    %51 = vector.extract_strided_slice %46 {offsets = [0, 0], sizes = [16, 8], strides = [1, 1]} : vector<32x16xf32> to vector<16x8xf32>
    %cst_66 = arith.constant dense<0.000000e+00> : vector<16x16xf32>
    %52 = tpu.matmul %49, %50, %cst_66 {dimension_numbers = #tpu.dot_dimension_numbers<[1], [1], [0], [0], [0, 0, 1, 0], [], []>} : vector<16x8xf32>, vector<16x8xf32>, vector<16x16xf32> -> vector<16x16xf32>
    %cst_67 = arith.constant dense<0xFF800000> : vector<16xf32>
    %53 = vector.multi_reduction <maximumf>, %52, %cst_67 [1] : vector<16x16xf32> to vector<16xf32>
    %54 = vector.shape_cast %53 : vector<16xf32> to vector<16x1xf32>
    %55 = vector.broadcast %54 : vector<16x1xf32> to vector<16x16xf32>
    %56 = arith.subf %52, %55 : vector<16x16xf32>
    %57 = math.exp %56 : vector<16x16xf32>
    %cst_68 = arith.constant dense<0.000000e+00> : vector<16xf32>
    %58 = vector.multi_reduction <add>, %57, %cst_68 [1] : vector<16x16xf32> to vector<16xf32>
    %59 = vector.shape_cast %58 : vector<16xf32> to vector<16x1xf32>
    %60 = tpu.reciprocal %59 {approx = true} : vector<16x1xf32> -> vector<16x1xf32>
    %61 = vector.broadcast %60 : vector<16x1xf32> to vector<16x16xf32>
    %62 = arith.mulf %57, %61 : vector<16x16xf32>
    %cst_69 = arith.constant dense<0.000000e+00> : vector<16x8xf32>
    %63 = tpu.matmul %62, %51, %cst_69 {dimension_numbers = #tpu.dot_dimension_numbers<[1], [0], [0], [1], [0, 0, 1, 1], [], []>} : vector<16x16xf32>, vector<16x8xf32>, vector<16x8xf32> -> vector<16x8xf32>
    %c0_70 = arith.constant 0 : index
    %c0_71 = arith.constant 0 : index
    %64 = vector.load %arg8[%c0_70, %c0_71] : memref<16x32xf32, #tpu.memory_space<vmem>>, vector<16x8xf32>
    tpu.vector_store %arg8[%c0_70, %c0_71], %63 {strides = array<i32>} : memref<16x32xf32, #tpu.memory_space<vmem>>, vector<16x8xf32>,
    %65 = vector.extract_strided_slice %22 {offsets = [0, 8], sizes = [16, 8], strides = [1, 1]} : vector<32x16xf32> to vector<16x8xf32>
    %cst_72 = arith.constant 0.353553385 : f32
    %66 = vector.broadcast %cst_72 : f32 to vector<16x8xf32>
    %67 = arith.mulf %65, %66 : vector<16x8xf32>
    %68 = vector.extract_strided_slice %34 {offsets = [0, 8], sizes = [16, 8], strides = [1, 1]} : vector<32x16xf32> to vector<16x8xf32>
    %69 = vector.extract_strided_slice %46 {offsets = [0, 8], sizes = [16, 8], strides = [1, 1]} : vector<32x16xf32> to vector<16x8xf32>
    %cst_73 = arith.constant dense<0.000000e+00> : vector<16x16xf32>
    %70 = tpu.matmul %67, %68, %cst_73 {dimension_numbers = #tpu.dot_dimension_numbers<[1], [1], [0], [0], [0, 0, 1, 0], [], []>} : vector<16x8xf32>, vector<16x8xf32>, vector<16x16xf32> -> vector<16x16xf32>
    %cst_74 = arith.constant dense<0xFF800000> : vector<16xf32>
    %71 = vector.multi_reduction <maximumf>, %70, %cst_74 [1] : vector<16x16xf32> to vector<16xf32>
    %72 = vector.shape_cast %71 : vector<16xf32> to vector<16x1xf32>
    %73 = vector.broadcast %72 : vector<16x1xf32> to vector<16x16xf32>
    %74 = arith.subf %70, %73 : vector<16x16xf32>
    %75 = math.exp %74 : vector<16x16xf32>
    %cst_75 = arith.constant dense<0.000000e+00> : vector<16xf32>
    %76 = vector.multi_reduction <add>, %75, %cst_75 [1] : vector<16x16xf32> to vector<16xf32>
    %77 = vector.shape_cast %76 : vector<16xf32> to vector<16x1xf32>
    %78 = tpu.reciprocal %77 {approx = true} : vector<16x1xf32> -> vector<16x1xf32>
    %79 = vector.broadcast %78 : vector<16x1xf32> to vector<16x16xf32>
    %80 = arith.mulf %75, %79 : vector<16x16xf32>
    %cst_76 = arith.constant dense<0.000000e+00> : vector<16x8xf32>
    %81 = tpu.matmul %80, %69, %cst_76 {dimension_numbers = #tpu.dot_dimension_numbers<[1], [0], [0], [1], [0, 0, 1, 1], [], []>} : vector<16x16xf32>, vector<16x8xf32>, vector<16x8xf32> -> vector<16x8xf32>
    %c0_77 = arith.constant 0 : index
    %c8 = arith.constant 8 : index
    %82 = vector.load %arg8[%c0_77, %c8] : memref<16x32xf32, #tpu.memory_space<vmem>>, vector<16x8xf32>
    tpu.vector_store %arg8[%c0_77, %c8], %81 {strides = array<i32>} : memref<16x32xf32, #tpu.memory_space<vmem>>, vector<16x8xf32>,
    %83 = vector.extract_strided_slice %22 {offsets = [16, 0], sizes = [16, 8], strides = [1, 1]} : vector<32x16xf32> to vector<16x8xf32>
    %cst_78 = arith.constant 0.353553385 : f32
    %84 = vector.broadcast %cst_78 : f32 to vector<16x8xf32>
    %85 = arith.mulf %83, %84 : vector<16x8xf32>
    %86 = vector.extract_strided_slice %34 {offsets = [16, 0], sizes = [16, 8], strides = [1, 1]} : vector<32x16xf32> to vector<16x8xf32>
    %87 = vector.extract_strided_slice %46 {offsets = [16, 0], sizes = [16, 8], strides = [1, 1]} : vector<32x16xf32> to vector<16x8xf32>
    %cst_79 = arith.constant dense<0.000000e+00> : vector<16x16xf32>
    %88 = tpu.matmul %85, %86, %cst_79 {dimension_numbers = #tpu.dot_dimension_numbers<[1], [1], [0], [0], [0, 0, 1, 0], [], []>} : vector<16x8xf32>, vector<16x8xf32>, vector<16x16xf32> -> vector<16x16xf32>
    %cst_80 = arith.constant dense<0xFF800000> : vector<16xf32>
    %89 = vector.multi_reduction <maximumf>, %88, %cst_80 [1] : vector<16x16xf32> to vector<16xf32>
    %90 = vector.shape_cast %89 : vector<16xf32> to vector<16x1xf32>
    %91 = vector.broadcast %90 : vector<16x1xf32> to vector<16x16xf32>
    %92 = arith.subf %88, %91 : vector<16x16xf32>
    %93 = math.exp %92 : vector<16x16xf32>
    %cst_81 = arith.constant dense<0.000000e+00> : vector<16xf32>
    %94 = vector.multi_reduction <add>, %93, %cst_81 [1] : vector<16x16xf32> to vector<16xf32>
    %95 = vector.shape_cast %94 : vector<16xf32> to vector<16x1xf32>
    %96 = tpu.reciprocal %95 {approx = true} : vector<16x1xf32> -> vector<16x1xf32>
    %97 = vector.broadcast %96 : vector<16x1xf32> to vector<16x16xf32>
    %98 = arith.mulf %93, %97 : vector<16x16xf32>
    %cst_82 = arith.constant dense<0.000000e+00> : vector<16x8xf32>
    %99 = tpu.matmul %98, %87, %cst_82 {dimension_numbers = #tpu.dot_dimension_numbers<[1], [0], [0], [1], [0, 0, 1, 1], [], []>} : vector<16x16xf32>, vector<16x8xf32>, vector<16x8xf32> -> vector<16x8xf32>
    %c0_83 = arith.constant 0 : index
    %c16 = arith.constant 16 : index
    %100 = vector.load %arg8[%c0_83, %c16] : memref<16x32xf32, #tpu.memory_space<vmem>>, vector<16x8xf32>
    tpu.vector_store %arg8[%c0_83, %c16], %99 {strides = array<i32>} : memref<16x32xf32, #tpu.memory_space<vmem>>, vector<16x8xf32>,
    %101 = vector.extract_strided_slice %22 {offsets = [16, 8], sizes = [16, 8], strides = [1, 1]} : vector<32x16xf32> to vector<16x8xf32>
    %cst_84 = arith.constant 0.353553385 : f32
    %102 = vector.broadcast %cst_84 : f32 to vector<16x8xf32>
    %103 = arith.mulf %101, %102 : vector<16x8xf32>
    %104 = vector.extract_strided_slice %34 {offsets = [16, 8], sizes = [16, 8], strides = [1, 1]} : vector<32x16xf32> to vector<16x8xf32>
    %105 = vector.extract_strided_slice %46 {offsets = [16, 8], sizes = [16, 8], strides = [1, 1]} : vector<32x16xf32> to vector<16x8xf32>
    %cst_85 = arith.constant dense<0.000000e+00> : vector<16x16xf32>
    %106 = tpu.matmul %103, %104, %cst_85 {dimension_numbers = #tpu.dot_dimension_numbers<[1], [1], [0], [0], [0, 0, 1, 0], [], []>} : vector<16x8xf32>, vector<16x8xf32>, vector<16x16xf32> -> vector<16x16xf32>
    %cst_86 = arith.constant dense<0xFF800000> : vector<16xf32>
    %107 = vector.multi_reduction <maximumf>, %106, %cst_86 [1] : vector<16x16xf32> to vector<16xf32>
    %108 = vector.shape_cast %107 : vector<16xf32> to vector<16x1xf32>
    %109 = vector.broadcast %108 : vector<16x1xf32> to vector<16x16xf32>
    %110 = arith.subf %106, %109 : vector<16x16xf32>
    %111 = math.exp %110 : vector<16x16xf32>
    %cst_87 = arith.constant dense<0.000000e+00> : vector<16xf32>
    %112 = vector.multi_reduction <add>, %111, %cst_87 [1] : vector<16x16xf32> to vector<16xf32>
    %113 = vector.shape_cast %112 : vector<16xf32> to vector<16x1xf32>
    %114 = tpu.reciprocal %113 {approx = true} : vector<16x1xf32> -> vector<16x1xf32>
    %115 = vector.broadcast %114 : vector<16x1xf32> to vector<16x16xf32>
    %116 = arith.mulf %111, %115 : vector<16x16xf32>
    %cst_88 = arith.constant dense<0.000000e+00> : vector<16x8xf32>
    %117 = tpu.matmul %116, %105, %cst_88 {dimension_numbers = #tpu.dot_dimension_numbers<[1], [0], [0], [1], [0, 0, 1, 1], [], []>} : vector<16x16xf32>, vector<16x8xf32>, vector<16x8xf32> -> vector<16x8xf32>
    %c0_89 = arith.constant 0 : index
    %c24 = arith.constant 24 : index
    %118 = vector.load %arg8[%c0_89, %c24] : memref<16x32xf32, #tpu.memory_space<vmem>>, vector<16x8xf32>
    tpu.vector_store %arg8[%c0_89, %c24], %117 {strides = array<i32>} : memref<16x32xf32, #tpu.memory_space<vmem>>, vector<16x8xf32>,
    %119 = tpu.iota {dimensions = array<i32: 0>} : vector<32x32xi32>
    %120 = tpu.iota {dimensions = array<i32: 1>} : vector<32x32xi32>
    %121 = arith.cmpi eq, %119, %120 : vector<32x32xi32>
    %cst_90 = arith.constant 1.000000e+00 : f32
    %cst_91 = arith.constant 0.000000e+00 : f32
    %122 = vector.broadcast %cst_90 : f32 to vector<32x32xf32>
    %123 = vector.broadcast %cst_91 : f32 to vector<32x32xf32>
    %124 = arith.select %121, %122, %123 : vector<32x32xi1>, vector<32x32xf32>
    %c0_92 = arith.constant 0 : index
    %c0_93 = arith.constant 0 : index
    %125 = vector.load %arg8[%c0_92, %c0_93] : memref<16x32xf32, #tpu.memory_space<vmem>>, vector<16x32xf32>
    %cst_94 = arith.constant dense<0.000000e+00> : vector<32x16xf32>
    %126 = tpu.matmul %124, %125, %cst_94 {dimension_numbers = #tpu.dot_dimension_numbers<[1], [1], [0], [0], [0, 0, 1, 0], [], []>} : vector<32x32xf32>, vector<16x32xf32>, vector<32x16xf32> -> vector<32x16xf32>
    %c0_95 = arith.constant 0 : index
    %c1_96 = arith.constant 1 : index
    %127 = vector.load %arg6[%c0_95, %c1_96] : memref<32x18xf32, #tpu.memory_space<vmem>>, vector<32x16xf32>
    tpu.vector_store %arg6[%c0_95, %c1_96], %126 {strides = array<i32>} : memref<32x18xf32, #tpu.memory_space<vmem>>, vector<32x16xf32>,
    %c0_97 = arith.constant 0 : index
    %c0_98 = arith.constant 0 : index
    %128 = vector.load %arg6[%c0_97, %c0_98] : memref<32x18xf32, #tpu.memory_space<vmem>>, vector<32x16xf32>
    %c0_99 = arith.constant 0 : index
    %c0_100 = arith.constant 0 : index
    %129 = vector.load %arg7[%c0_99, %c0_100] : memref<104x16xf32, #tpu.memory_space<vmem>>, vector<32x16xf32>
    tpu.vector_store %arg7[%c0_99, %c0_100], %128 {strides = array<i32>} : memref<104x16xf32, #tpu.memory_space<vmem>>, vector<32x16xf32>,
    %c32_101 = arith.constant 32 : index
    %c0_102 = arith.constant 0 : index
    %130 = vector.load %arg7[%c32_101, %c0_102] : memref<104x16xf32, #tpu.memory_space<vmem>>, vector<32x16xf32>
    tpu.vector_store %arg7[%c32_101, %c0_102], %126 {strides = array<i32>} : memref<104x16xf32, #tpu.memory_space<vmem>>, vector<32x16xf32>,
    %c0_103 = arith.constant 0 : index
    %c2_104 = arith.constant 2 : index
    %131 = vector.load %arg6[%c0_103, %c2_104] : memref<32x18xf32, #tpu.memory_space<vmem>>, vector<32x16xf32>
    %c64_105 = arith.constant 64 : index
    %c0_106 = arith.constant 0 : index
    %132 = vector.load %arg7[%c64_105, %c0_106] : memref<104x16xf32, #tpu.memory_space<vmem>>, vector<32x16xf32>
    tpu.vector_store %arg7[%c64_105, %c0_106], %131 {strides = array<i32>} : memref<104x16xf32, #tpu.memory_space<vmem>>, vector<32x16xf32>,
    %c3 = arith.constant 3 : index
    %c0_107 = arith.constant 0 : index
    %c0_108 = arith.constant 0 : index
    %133 = vector.load %arg4[%c3, %c0_107, %c0_108] : memref<4x32x104xf32, #tpu.memory_space<vmem>>, vector<1x32x104xf32>
    %134 = vector.shape_cast %133 : vector<1x32x104xf32> to vector<32x104xf32>
    %c0_109 = arith.constant 0 : index
    %c0_110 = arith.constant 0 : index
    %135 = vector.load %arg7[%c0_109, %c0_110] : memref<104x16xf32, #tpu.memory_space<vmem>>, vector<104x16xf32>
    %cst_111 = arith.constant dense<0.000000e+00> : vector<32x16xf32>
    %136 = tpu.matmul %134, %135, %cst_111 {dimension_numbers = #tpu.dot_dimension_numbers<[1], [0], [0], [1], [0, 0, 1, 1], [], []>} : vector<32x104xf32>, vector<104x16xf32>, vector<32x16xf32> -> vector<32x16xf32>
    %c0_112 = arith.constant 0 : index
    %c0_113 = arith.constant 0 : index
    %c0_114 = arith.constant 0 : index
    %137 = vector.load %arg5[%c0_112, %c0_113, %c0_114] : memref<1x32x16xf32, #tpu.memory_space<vmem>>, vector<1x32x16xf32>
    %138 = vector.shape_cast %137 : vector<1x32x16xf32> to vector<32x16xf32>
    %139 = vector.shape_cast %136 : vector<32x16xf32> to vector<1x32x16xf32>
    tpu.vector_store %arg5[%c0_112, %c0_113, %c0_114], %139 {strides = array<i32>} : memref<1x32x16xf32, #tpu.memory_space<vmem>>, vector<1x32x16xf32>,
    return
  }
  func.func @transform_0(%arg0: i32) -> (i32, i32, i32) {
    %c0_i32 = arith.constant 0 : i32
    %c0_i32_0 = arith.constant 0 : i32
    %c0_i32_1 = arith.constant 0 : i32
    return %arg0, %c0_i32, %c0_i32_0 : i32, i32, i32
  }
  func.func @transform_1(%arg0: i32) -> (i32, i32, i32) {
    %c0_i32 = arith.constant 0 : i32
    %c0_i32_0 = arith.constant 0 : i32
    %c0_i32_1 = arith.constant 0 : i32
    return %arg0, %c0_i32, %c0_i32_0 : i32, i32, i32
  }
  func.func @transform_2(%arg0: i32) -> (i32, i32, i32) {
    %c0_i32 = arith.constant 0 : i32
    %c0_i32_0 = arith.constant 0 : i32
    %c0_i32_1 = arith.constant 0 : i32
    return %arg0, %c0_i32, %c0_i32_0 : i32, i32, i32
  }
  func.func @transform_3(%arg0: i32) -> (i32, i32, i32) {
    %c0_i32 = arith.constant 0 : i32
    %c0_i32_0 = arith.constant 0 : i32
    %c0_i32_1 = arith.constant 0 : i32
    %c0_i32_2 = arith.constant 0 : i32
    return %c0_i32, %c0_i32_0, %c0_i32_1 : i32, i32, i32
  }
  func.func @transform_4(%arg0: i32) -> (i32, i32, i32) {
    %c0_i32 = arith.constant 0 : i32
    %c0_i32_0 = arith.constant 0 : i32
    %c0_i32_1 = arith.constant 0 : i32
    return %arg0, %c0_i32, %c0_i32_0 : i32, i32, i32
  }
}

</mosaic_0001>

<bundles_post_ra>
// kernel: tpu_custom_call.1
= control target key start
LH: loop header
LB: loop body
LE: loop exit
PB: predicated region body
PF: predicated region fallthrough
CT: control target
= control target key end

     0   :  { %s1457_s15 = smov 0   ;;  %s1796_s0 = inlined_call_operand.vmem [shape: f32[2,32,16], index: 0, kind: input, shape index: {}]   ;;  %s1797_s1 = inlined_call_operand.vmem [shape: f32[2,32,16], index: 1, kind: input, shape index: {}]   ;;  %s1798_s2 = inlined_call_operand.vmem [shape: f32[2,32,16], index: 2, kind: input, shape index: {}]   ;;  %s1799_s3 = inlined_call_operand.vmem [shape: f32[4,32,104], index: 3, kind: input, shape index: {}]   ;;  %s1800_s4 = inlined_call_operand.vmem [shape: f32[2,32,16], index: 4, kind: output, shape index: {}]  }
   0x1 LB: > { %s1281_s16 = sadd.s32 4294967295, %s1423_s15   ;;  %p1285_p0 = scmp.ge.s32.totalorder %s1423_s15, 1  ;;  %s1423_s15 = sphi %s1457_s15, %s14_s15  }
   0x2   : > { %p182_p1 = scmp.lt.s32.totalorder %s1423_s15, 3 }
   0x4   : > { %p183_p2 = pnand %p1285_p0, %p182_p1 }
   0x5   : > { %p218_p3 = scmp.lt.s32.totalorder (!%p183_p2), %s1281_s16, 1  ;;  %s1426_s21 = smov (!%p183_p2), 1  }
   0x6   : > { %186 = sbr.rel (%p183_p2) target bundleno = 2864 (0xb30), region = 36  ;;  %s1427_s25 = smov (!%p183_p2), 126  }
   0x7   : > { %s1429_s6 = smov (!%p183_p2), 8   ;;  %s1430_s7 = smov (!%p183_p2), 16  }
   0x8   : > { %s1431_s8 = smov (!%p183_p2), 24  }
   0xb   : > { %vm238_vm0 = vcmask 7168   ;;  %vm243_vm1 = vcmask 146568   ;;  %v1425_v0 = vmov 0.0   ;;  %s1802_s16 = smov (!%p218_p3, %s1281_s16), 1  ;;  %vm252_vm2 = vcmask 130048   ;;  %v315_v61 = vld [vmem:[%s1799_s3] sm:$0xff] }
   0xc   : > { %242 = vst.msk [vmem:[#allocation2 + $0x18] sm:$0xff] %vm238_vm0, %v1425_v0  ;;  %s1469_s17 = sshll.u32 %s1802_s16, 5  ;;  %vm274_vm3 = vcmask 138248   ;;  %v248_v29 = vlaneseq  ;;  %vm332_vm5 = vcmask 850944   ;;  %v316_v63 = vld [vmem:[%s1799_s3 + $0x8] sm:$0xff]  ;;  %vm614_vm6 = vcmask 64512  }
   0xd   : > { %247 = vst.msk [vmem:[#allocation2 + $0x18] sm:$0xff] %vm243_vm1, %v1425_v0  ;;  %s222_s20 = scalar_lea.vmem %s1796_s0, %s1469_s17  ;;  %s227_s24 = scalar_lea.vmem %s1797_s1, %s1469_s17  ;;  %vm809_vm7 = vcmask 130112   ;;  %vm908_vm8 = vcmask 195712   ;;  %vm1017_vm9 = vcmask 261312   ;;  %vm1035_vm10 = vcmask 261120  }
   0xe   : > { %239 = vst.msk [vmem:[#allocation2] sm:$0xff] %vm238_vm0, %v1425_v0  ;;  %v257_v1 = vld [vmem:[%s222_s20 + $0x18] sm:$0xff]  ;;  %v255_v2 = vld [vmem:[%s222_s20 + $0x8] sm:$0xff]  ;;  %v256_v3 = vld [vmem:[%s222_s20 + $0x10] sm:$0xff]  ;;  %v1544_v30 = vshrl.u32 %v248_v29, 7  ;;  %s1564_s28 = scalar_lea.vmem %s1798_s2, %s1469_s17  ;;  %s1428_s16 = smov 120  }
   0xf   : > { %240 = vst.msk [vmem:[#allocation2 + $0x8] sm:$0xff] %vm238_vm0, %v1425_v0  ;;  %268 = vrot.lane.b32.xlu0 %v257_v1, %s1426_s21  ;;  %264 = vrot.lane.b32.xlu1 %v255_v2, %s1426_s21  ;;  %v1487_v4 = vld [vmem:[%s227_s24 + $0x18] sm:$0xff]  ;;  %v254_v5 = vld [vmem:[%s222_s20] sm:$0xff]  ;;  %s237_s19 = scalar_lea.vmem %s1800_s4, %s1469_s17 }
  0x10   : > { %241 = vst.msk [vmem:[#allocation2 + $0x10] sm:$0xff] %vm238_vm0, %v1425_v0  ;;  %388 = vrot.lane.b32.xlu2 %v1487_v4, %s1426_s21  ;;  %v1497_v6 = vld [vmem:[%s227_s24 + $0x10] sm:$0xff]  ;;  %v1503_v7 = vld [vmem:[%s227_s24] sm:$0xff]  ;;  %v1505_v8 = vld [vmem:[%s227_s24 + $0x8] sm:$0xff]  ;;  %vm250_vm4 = vcmp.eq.s32.totalorder %v1544_v30, 0 }
  0x11   : > { %246 = vst.msk [vmem:[#allocation2 + $0x10] sm:$0xff] %vm243_vm1, %v1425_v0  ;;  %v251_v31 = vsel %vm250_vm4, 1.0, %v1425_v0  ;;  %v494_v40 = vld [vmem:[%s1564_s28 + $0x8] sm:$0xff]  ;;  %v496_v47 = vld [vmem:[%s1564_s28 + $0x18] sm:$0xff]  ;;  %v495_v52 = vld [vmem:[%s1564_s28 + $0x10] sm:$0xff] }
  0x12   : > { %290 = vst.msk [vmem:[#allocation3 + $0x38] sm:$0xff] %vm252_vm2, %v257_v1  ;;  %v493_v54 = vld [vmem:[%s1564_s28] sm:$0xff] }
  0x13   : > { %289 = vst.msk [vmem:[#allocation3 + $0x30] sm:$0xff] %vm252_vm2, %v256_v3 }
  0x14   : > { %288 = vst.msk [vmem:[#allocation3 + $0x28] sm:$0xff] %vm252_vm2, %v255_v2 }
  0x15   : > { %287 = vst.msk [vmem:[#allocation3 + $0x20] sm:$0xff] %vm252_vm2, %v254_v5 }
  0x16   : > { %244 = vst.msk [vmem:[#allocation2] sm:$0xff] %vm243_vm1, %v1425_v0 }
  0x17   : > { %245 = vst.msk [vmem:[#allocation2 + $0x8] sm:$0xff] %vm243_vm1, %v1425_v0  ;;  %266 = vrot.lane.b32.xlu0 %v256_v3, %s1426_s21  ;;  %262 = vrot.lane.b32.xlu1 %v254_v5, %s1426_s21  ;;  %v1298_v3 = vld [vmem:[%s1799_s3 + $0x20] sm:$0xff]  ;;  %v1299_v5 = vld [vmem:[%s1799_s3 + $0x28] sm:$0xff] }
  0x18   : > { %386 = vrot.lane.b32.xlu2 %v1497_v6, %s1426_s21  ;;  %253 = vst.msk [vmem:[#allocation3 + $0x60] sm:$0xff] %vm252_vm2, %v251_v31 }
  0x19   : > { %v326_v36 = vld [vmem:[#allocation3 + $0x38] sm:$0xff] }
  0x1a   : > { %409 = vst.msk [vmem:[#allocation3 + $0x38] sm:$0xff] %vm252_vm2, %v1487_v4  ;;  %v325_v37 = vld [vmem:[#allocation3 + $0x30] sm:$0xff] }
  0x1b   : > { %408 = vst.msk [vmem:[#allocation3 + $0x30] sm:$0xff] %vm252_vm2, %v1497_v6  ;;  %v324_v38 = vld [vmem:[#allocation3 + $0x28] sm:$0xff] }
  0x1c   : > { %407 = vst.msk [vmem:[#allocation3 + $0x28] sm:$0xff] %vm252_vm2, %v1505_v8  ;;  %v323_v39 = vld [vmem:[#allocation3 + $0x20] sm:$0xff] }
  0x1d   : > { %406 = vst.msk [vmem:[#allocation3 + $0x20] sm:$0xff] %vm252_vm2, %v1503_v7 }
  0x1f   : > { %382 = vrot.lane.b32.xlu1 %v1503_v7, %s1426_s21  ;;  %384 = vrot.lane.b32.xlu0 %v1505_v8, %s1426_s21  ;;  %v1549_v32 = vld [vmem:[#allocation3 + $0x60] sm:$0xff] }
  0x20   : > { %348 = vmatpush.msra.mxu0 %v1549_v32  ;;  %467 = vmatpush.msra.mxu1 %v1549_v32 }
  0x21   : > { %586 = vmatpush.msra.mxu2 %v1549_v32  ;;  %v446_v46 = vld [vmem:[#allocation3 + $0x38] sm:$0xff] }
  0x22   : > { %528 = vst.msk [vmem:[#allocation3 + $0x38] sm:$0xff] %vm252_vm2, %v496_v47  ;;  %v445_v51 = vld [vmem:[#allocation3 + $0x30] sm:$0xff] }
  0x23   : > { %v444_v42 = vld [vmem:[#allocation3 + $0x28] sm:$0xff]  ;;  %527 = vst.msk [vmem:[#allocation3 + $0x30] sm:$0xff] %vm252_vm2, %v495_v52 }
  0x24   : > { %526 = vst.msk [vmem:[#allocation3 + $0x28] sm:$0xff] %vm252_vm2, %v494_v40  ;;  %v443_v53 = vld [vmem:[#allocation3 + $0x20] sm:$0xff] }
  0x25   : > { %525 = vst.msk [vmem:[#allocation3 + $0x20] sm:$0xff] %vm252_vm2, %v493_v54 }
  0x2a   : > { %v564_v31 = vld [vmem:[#allocation3 + $0x30] sm:$0xff] }
  0x6a   : > { %v389_v11 = vpop.permute.xlu2 %388 }
  0x72   : > { %v387_v16 = vpop.permute.xlu2 %386 }
  0x81   : > { %v269_v9 = vpop.permute.xlu0 %268  ;;  %v265_v10 = vpop.permute.xlu1 %264 }
  0x82   : > { %278 = vst.msk [vmem:[#allocation2 + $0x18] sm:$0xff] %vm274_vm3, %v269_v9 }
  0x83   : > { %276 = vst.msk [vmem:[#allocation2 + $0x8] sm:$0xff] %vm274_vm3, %v265_v10 }
  0x89   : > { %v267_v12 = vpop.permute.xlu0 %266  ;;  %v294_v13 = vld [vmem:[#allocation2 + $0x18] sm:$0xff]  ;;  %v263_v14 = vpop.permute.xlu1 %262 }
  0x8a   : > { %277 = vst.msk [vmem:[#allocation2 + $0x10] sm:$0xff] %vm274_vm3, %v267_v12  ;;  %305 = vrot.lane.b32.xlu2 %v294_v13, %s1427_s25  ;;  %v292_v15 = vld [vmem:[#allocation2 + $0x8] sm:$0xff] }
  0x8b   : > { %397 = vst.msk [vmem:[#allocation2 + $0x18] sm:$0xff] %vm274_vm3, %v389_v11  ;;  %301 = vrot.lane.b32.xlu1 %v292_v15, %s1427_s25 }
  0x8c   : > { %286 = vst.msk [vmem:[#allocation3 + $0x18] sm:$0xff] %vm252_vm2, %v294_v13 }
  0x8d   : > { %275 = vst.msk [vmem:[#allocation2] sm:$0xff] %vm274_vm3, %v263_v14 }
  0x8e   : > { %284 = vst.msk [vmem:[#allocation3 + $0x8] sm:$0xff] %vm252_vm2, %v292_v15 }
  0x91   : > { %v293_v17 = vld [vmem:[#allocation2 + $0x10] sm:$0xff]  ;;  %v385_v18 = vpop.permute.xlu0 %384  ;;  %v383_v19 = vpop.permute.xlu1 %382 }
  0x92   : > { %303 = vrot.lane.b32.xlu0 %v293_v17, %s1427_s25  ;;  %396 = vst.msk [vmem:[#allocation2 + $0x10] sm:$0xff] %vm274_vm3, %v387_v16  ;;  %v413_v20 = vld [vmem:[#allocation2 + $0x18] sm:$0xff] }
  0x93   : > { %285 = vst.msk [vmem:[#allocation3 + $0x10] sm:$0xff] %vm252_vm2, %v293_v17  ;;  %v1527_v22 = vld [vmem:[#allocation3 + $0x18] sm:$0xff] }
  0x94   : > { %v291_v21 = vld [vmem:[#allocation2] sm:$0xff]  ;;  %395 = vst.msk [vmem:[#allocation2 + $0x8] sm:$0xff] %vm274_vm3, %v385_v18 }
  0x95   : > { %299 = vrot.lane.b32.xlu2 %v291_v21, %s1427_s25  ;;  %394 = vst.msk [vmem:[#allocation2] sm:$0xff] %vm274_vm3, %v383_v19  ;;  %v1535_v26 = vld [vmem:[#allocation3 + $0x8] sm:$0xff] }
  0x96   : > { %283 = vst.msk [vmem:[#allocation3] sm:$0xff] %vm252_vm2, %v291_v21 }
  0x97   : > { %405 = vst.msk [vmem:[#allocation3 + $0x18] sm:$0xff] %vm252_vm2, %v413_v20 }
  0x99   : > { %v412_v23 = vld [vmem:[#allocation2 + $0x10] sm:$0xff] }
  0x9a   : > { %424 = vrot.lane.b32.xlu0 %v413_v20, %s1427_s25  ;;  %422 = vrot.lane.b32.xlu1 %v412_v23, %s1427_s25  ;;  %v1532_v24 = vld [vmem:[#allocation3 + $0x10] sm:$0xff] }
  0x9b   : > { %v411_v25 = vld [vmem:[#allocation2 + $0x8] sm:$0xff]  ;;  %404 = vst.msk [vmem:[#allocation3 + $0x10] sm:$0xff] %vm252_vm2, %v412_v23 }
  0x9c   : > { %v410_v27 = vld [vmem:[#allocation2] sm:$0xff]  ;;  %403 = vst.msk [vmem:[#allocation3 + $0x8] sm:$0xff] %vm252_vm2, %v411_v25 }
  0x9d   : > { %420 = vrot.lane.b32.xlu2 %v411_v25, %s1427_s25  ;;  %v1539_v28 = vld [vmem:[#allocation3] sm:$0xff] }
  0x9e   : > { %402 = vst.msk [vmem:[#allocation3] sm:$0xff] %vm252_vm2, %v410_v27  ;;  %v442_v62 = vld [vmem:[#allocation3 + $0x18] sm:$0xff] }
  0xa2   : > { %418 = vrot.lane.b32.xlu0 %v410_v27, %s1427_s25  ;;  %507 = vrot.lane.b32.xlu1 %v496_v47, %s1426_s21  ;;  %v441_v1 = vld [vmem:[#allocation3 + $0x10] sm:$0xff] }
  0xa3   : > { %v440_v2 = vld [vmem:[#allocation3 + $0x8] sm:$0xff] }
  0xa5   : > { %505 = vrot.lane.b32.xlu2 %v495_v52, %s1426_s21  ;;  %v439_v4 = vld [vmem:[#allocation3] sm:$0xff] }
  0xaa   : > { %503 = vrot.lane.b32.xlu0 %v494_v40, %s1426_s21  ;;  %501 = vrot.lane.b32.xlu1 %v493_v54, %s1426_s21 }
  0xe4   : > { %v306_v33 = vpop.permute.xlu2 %305 }
  0xe5   : > { %314 = vst.msk [vmem:[#allocation3 + $0x58] sm:$0xff] %vm252_vm2, %v306_v33  ;;  %v562_v33 = vld [vmem:[#allocation3 + $0x20] sm:$0xff] }
  0xec   : > { %v330_v34 = vld [vmem:[#allocation3 + $0x58] sm:$0xff] }
  0xed   : > { %349 = vmatpush.msra.mxu0 %v330_v34 }
  0xef   : > { %v300_v35 = vpop.permute.xlu2 %299 }
  0xf0   : > { %311 = vst.msk [vmem:[#allocation3 + $0x40] sm:$0xff] %vm252_vm2, %v300_v35 }
  0xf7   : > { %v421_v43 = vpop.permute.xlu2 %420  ;;  %v327_v55 = vld [vmem:[#allocation3 + $0x40] sm:$0xff] }
  0xfd   : > { %v302_v41 = vpop.permute.xlu1 %301 }
  0xfe   : > { %312 = vst.msk [vmem:[#allocation3 + $0x48] sm:$0xff] %vm252_vm2, %v302_v41 }
  0xff   : > { %v506_v6 = vpop.permute.xlu2 %505 }
 0x100   : > { %515 = vst.msk [vmem:[#allocation2 + $0x10] sm:$0xff] %vm274_vm3, %v506_v6 }
 0x104   : > { %v304_v44 = vpop.permute.xlu0 %303 }
 0x105   : > { %313 = vst.msk [vmem:[#allocation3 + $0x50] sm:$0xff] %vm252_vm2, %v304_v44  ;;  %v328_v45 = vld [vmem:[#allocation3 + $0x48] sm:$0xff] }
 0x106   : > { %431 = vst.msk [vmem:[#allocation3 + $0x48] sm:$0xff] %vm252_vm2, %v421_v43 }
 0x107   : > { %v531_v8 = vld [vmem:[#allocation2 + $0x10] sm:$0xff] }
 0x108   : > { %541 = vrot.lane.b32.xlu0 %v531_v8, %s1427_s25  ;;  %523 = vst.msk [vmem:[#allocation3 + $0x10] sm:$0xff] %vm252_vm2, %v531_v8 }
 0x10c   : > { %v425_v48 = vpop.permute.xlu0 %424  ;;  %v329_v49 = vld [vmem:[#allocation3 + $0x50] sm:$0xff]  ;;  %v423_v50 = vpop.permute.xlu1 %422 }
 0x10d   : > { %433 = vst.msk [vmem:[#allocation3 + $0x58] sm:$0xff] %vm252_vm2, %v425_v48  ;;  %350 = vmatpush.msra.mxu0 %v329_v49  ;;  %v448_v59 = vld [vmem:[#allocation3 + $0x48] sm:$0xff] }
 0x10e   : > { %432 = vst.msk [vmem:[#allocation3 + $0x50] sm:$0xff] %vm252_vm2, %v423_v50 }
 0x10f   : > { %351 = vmatpush.msra.mxu0 %v328_v45  ;;  %v560_v35 = vld [vmem:[#allocation3 + $0x10] sm:$0xff] }
 0x111   : > { %352 = vmatpush.msra.mxu0 %v327_v55 }
 0x113   : > { %353 = vmatpush.msra.mxu0 %v326_v36 }
 0x114   : > { %v419_v56 = vpop.permute.xlu0 %418  ;;  %v450_v57 = vld [vmem:[#allocation3 + $0x58] sm:$0xff]  ;;  %v508_v10 = vpop.permute.xlu1 %507 }
 0x115   : > { %430 = vst.msk [vmem:[#allocation3 + $0x40] sm:$0xff] %vm252_vm2, %v419_v56  ;;  %354 = vmatpush.msra.mxu0 %v325_v37  ;;  %468 = vmatpush.msra.mxu1 %v450_v57  ;;  %v449_v58 = vld [vmem:[#allocation3 + $0x50] sm:$0xff] }
 0x116   : > { %516 = vst.msk [vmem:[#allocation2 + $0x18] sm:$0xff] %vm274_vm3, %v508_v10 }
 0x117   : > { %355 = vmatpush.msra.mxu0 %v324_v38  ;;  %469 = vmatpush.msra.mxu1 %v449_v58  ;;  %v1306_v38 = vld [vmem:[%s1799_s3 + $0x40] sm:$0xff]  ;;  %v1300_v58 = vld [vmem:[%s1799_s3 + $0x30] sm:$0xff] }
 0x119   : > { %356 = vmatpush.msra.mxu0 %v323_v39  ;;  %470 = vmatpush.msra.mxu1 %v448_v59  ;;  %v1307_v39 = vld [vmem:[%s1799_s3 + $0x48] sm:$0xff] }
 0x11b   : > { %357 = vmatpush.msra.mxu0 %v1527_v22 }
 0x11c   : > { %v447_v60 = vld [vmem:[#allocation3 + $0x40] sm:$0xff]  ;;  %v504_v7 = vpop.permute.xlu0 %503  ;;  %v502_v11 = vpop.permute.xlu1 %501 }
 0x11d   : > { %358 = vmatpush.msra.mxu0 %v1532_v24  ;;  %471 = vmatpush.msra.mxu1 %v447_v60  ;;  %514 = vst.msk [vmem:[#allocation2 + $0x8] sm:$0xff] %vm274_vm3, %v504_v7  ;;  %v532_v12 = vld [vmem:[#allocation2 + $0x18] sm:$0xff] }
 0x11e   : > { %513 = vst.msk [vmem:[#allocation2] sm:$0xff] %vm274_vm3, %v502_v11  ;;  %543 = vrot.lane.b32.xlu2 %v532_v12, %s1427_s25  ;;  %v1301_v60 = vld [vmem:[%s1799_s3 + $0x38] sm:$0xff] }
 0x11f   : > { %359 = vmatpush.msra.mxu0 %v1535_v26  ;;  %472 = vmatpush.msra.mxu1 %v446_v46  ;;  %524 = vst.msk [vmem:[#allocation3 + $0x18] sm:$0xff] %vm252_vm2, %v532_v12  ;;  %v318_v7 = vld [vmem:[%s1799_s3 + $0x18] sm:$0xff] }
 0x121   : > { %360 = vmatpush.msra.mxu0 %v1539_v28  ;;  %473 = vmatpush.msra.mxu1 %v445_v51  ;;  %v565_v28 = vld [vmem:[#allocation3 + $0x38] sm:$0xff] }
 0x122   : > { %1294 = vmatmul.msk.f32.vlgmr.msra.gmra.mxu0 %vm332_vm5, %v315_v61  ;;  %v317_v61 = vld [vmem:[%s1799_s3 + $0x10] sm:$0xff] }
 0x123   : > { %474 = vmatpush.msra.mxu1 %v444_v42 }
 0x124   : > { %v530_v9 = vld [vmem:[#allocation2 + $0x8] sm:$0xff] }
 0x125   : > { %475 = vmatpush.msra.mxu1 %v443_v53  ;;  %539 = vrot.lane.b32.xlu1 %v530_v9, %s1427_s25  ;;  %522 = vst.msk [vmem:[#allocation3 + $0x8] sm:$0xff] %vm252_vm2, %v530_v9  ;;  %v529_v13 = vld [vmem:[#allocation2] sm:$0xff] }
 0x126   : > { %537 = vrot.lane.b32.xlu2 %v529_v13, %s1427_s25  ;;  %521 = vst.msk [vmem:[#allocation3] sm:$0xff] %vm252_vm2, %v529_v13  ;;  %v561_v34 = vld [vmem:[#allocation3 + $0x18] sm:$0xff] }
 0x127   : > { %476 = vmatpush.msra.mxu1 %v442_v62 }
 0x129   : > { %477 = vmatpush.msra.mxu1 %v441_v1 }
 0x12a   : > { %1295 = vmatmul.msk.f32.gmra.mxu0 %vm332_vm5, %v316_v63 }
 0x12b   : > { %478 = vmatpush.msra.mxu1 %v440_v2 }
 0x12c   : > { %v559_v36 = vld [vmem:[#allocation3 + $0x8] sm:$0xff] }
 0x12d   : > { %479 = vmatpush.msra.mxu1 %v439_v4  ;;  %v558_v37 = vld [vmem:[#allocation3] sm:$0xff] }
 0x12e   : > { %1302 = vmatmul.msk.f32.vlgmr.msra.gmra.mxu1 %vm332_vm5, %v1298_v3 }
 0x12f   : > { %1172 = vmatpush.msrb.mxu1 %v1549_v32  ;;  %v563_v32 = vld [vmem:[#allocation3 + $0x28] sm:$0xff] }
 0x132   : > { %1296 = vmatmul.msk.f32.gmra.mxu0 %vm332_vm5, %v317_v61 }
 0x136   : > { %1303 = vmatmul.msk.f32.gmra.mxu1 %vm332_vm5, %v1299_v5 }
 0x13a   : > { %1297 = vmatmul.msk.f32.gmra.mxu0 %vm332_vm5, %v318_v7 }
 0x13e   : > { %1304 = vmatmul.msk.f32.gmra.mxu1 %vm332_vm5, %v1300_v58 }
 0x146   : > { %1305 = vmatmul.msk.f32.gmra.mxu1 %vm332_vm5, %v1301_v60 }
 0x178   : > { %v544_v20 = vpop.permute.xlu2 %543 }
 0x179   : > { %552 = vst.msk [vmem:[#allocation3 + $0x58] sm:$0xff] %vm252_vm2, %v544_v20 }
 0x17a   : > { %v542_v21 = vpop.permute.xlu0 %541 }
 0x17b   : > { %551 = vst.msk [vmem:[#allocation3 + $0x50] sm:$0xff] %vm252_vm2, %v542_v21 }
 0x180   : > { %v538_v23 = vpop.permute.xlu2 %537  ;;  %v569_v24 = vld [vmem:[#allocation3 + $0x58] sm:$0xff] }
 0x181   : > { %549 = vst.msk [vmem:[#allocation3 + $0x40] sm:$0xff] %vm252_vm2, %v538_v23  ;;  %587 = vmatpush.msra.mxu2 %v569_v24 }
 0x182   : > { %v568_v25 = vld [vmem:[#allocation3 + $0x50] sm:$0xff] }
 0x183   : > { %588 = vmatpush.msra.mxu2 %v568_v25 }
 0x188   : > { %v566_v27 = vld [vmem:[#allocation3 + $0x40] sm:$0xff] }
 0x197   : > { %v540_v22 = vpop.permute.xlu1 %539 }
 0x198   : > { %550 = vst.msk [vmem:[#allocation3 + $0x48] sm:$0xff] %vm252_vm2, %v540_v22 }
 0x19f   : > { %v362_v15 = vpop.f32.mrf.mxu0  ;;  %v567_v26 = vld [vmem:[#allocation3 + $0x48] sm:$0xff] }
 0x1a0   : > { %v1622_v17 = vmul.f32 0.35355338, %v362_v15  ;;  %589 = vmatpush.msra.mxu2 %v567_v26 }
 0x1a2   : > { %590 = vmatpush.msra.mxu2 %v566_v27 }
 0x1a4   : > { %591 = vmatpush.msra.mxu2 %v565_v28 }
 0x1a6   : > { %592 = vmatpush.msra.mxu2 %v564_v31 }
 0x1a7   : > { %v365_v18 = vpop.f32.mrf.mxu0 }
 0x1a8   : > { %v613_v19 = vmul.f32 0.35355338, %v365_v18  ;;  %593 = vmatpush.msra.mxu2 %v563_v32 }
 0x1aa   : > { %594 = vmatpush.msra.mxu2 %v562_v33 }
 0x1ab   : > { %v481_v14 = vpop.f32.mrf.mxu1 }
 0x1ac   : > { %595 = vmatpush.msra.mxu2 %v561_v34 }
 0x1ae   : > { %596 = vmatpush.msra.mxu2 %v560_v35 }
 0x1af   : > { %v368_v9 = vpop.f32.mrf.mxu0 }
 0x1b0   : > { %597 = vmatpush.msra.mxu2 %v559_v36  ;;  %v1678_v10 = vmul.f32 0.35355338, %v368_v9 }
 0x1b2   : > { %598 = vmatpush.msra.mxu2 %v558_v37  ;;  %v1308_v37 = vld [vmem:[%s1799_s3 + $0x50] sm:$0xff] }
 0x1b3   : > { %v484_v16 = vpop.f32.mrf.mxu1  ;;  %1310 = vmatmul.msk.f32.vlgmr.msra.gmra.mxu2 %vm332_vm5, %v1306_v38  ;;  %v1309_v38 = vld [vmem:[%s1799_s3 + $0x58] sm:$0xff] }
 0x1b4   : > { %1314 = vmatpush.xpose.msk.msra.mxu3 %vm614_vm6, %v484_v16 }
 0x1b7   : > { %v371_v18 = vpop.f32.mrf.mxu0 }
 0x1b8   : > { %1315 = vmatpush.xpose.msk.msra.mxu3 %vm614_vm6, %v481_v14 }
 0x1bb   : > { %1316 = vmatmul.msk.f32.vlgmr.msra.gmra.mxu3 %vm614_vm6, %v1622_v17  ;;  %1311 = vmatmul.msk.f32.gmra.mxu2 %vm332_vm5, %v1307_v39  ;;  %v487_v6 = vpop.f32.mrf.mxu1 }
 0x1c3   : > { %1317 = vmatmul.msk.f32.gmra.mxu3 %vm614_vm6, %v613_v19  ;;  %v1674_v8 = vpop.f32.mrf.mxu1  ;;  %1312 = vmatmul.msk.f32.gmra.mxu2 %vm332_vm5, %v1308_v37 }
 0x1c4   : > { %1326 = vmatpush.xpose.msk.msrb.mxu0 %vm614_vm6, %v1674_v8 }
 0x1c8   : > { %1327 = vmatpush.xpose.msk.msrb.mxu0 %vm614_vm6, %v487_v6 }
 0x1cb   : > { %1328 = vmatmul.msk.f32.vlgmr.msrb.gmra.mxu0 %vm614_vm6, %v1678_v10  ;;  %1313 = vmatmul.msk.f32.gmra.mxu2 %vm332_vm5, %v1309_v38 }
 0x236   : > { %v1645_v44 = vpop.f32.mrf.mxu2 }
 0x23e   : > { %v644_v40 = vpop.f32.mrf.mxu3  ;;  %v603_v45 = vpop.f32.mrf.mxu2 }
 0x23f   : > { %v650_v41 = vsel %vm252_vm2, %v644_v40, -inf  ;;  %692 = vmatpush.msrb.mxu3 %v603_v45 }
 0x240   : > { %651 = vmax.xlane.f32.xlu0 %v650_v41 }
 0x241   : > { %693 = vmatpush.msrb.mxu3 %v1645_v44 }
 0x246   : > { %v647_v42 = vpop.f32.mrf.mxu3 }
 0x247   : > { %v653_v43 = vsel %vm252_vm2, %v647_v42, -inf }
 0x248   : > { %654 = vmax.xlane.f32.xlu1 %v653_v43  ;;  %v843_v28 = vpop.f32.mrf.mxu0 }
 0x249   : > { %v849_v31 = vsel %vm252_vm2, %v843_v28, -inf }
 0x254   : > { %709 = vrot.lane.b32.xlu0 %v484_v16, %s1428_s16 }
 0x25c   : > { %705 = vrot.lane.b32.xlu0 %v613_v19, %s1428_s16  ;;  %v813_v19 = vmul.f32 0.35355338, %v371_v18 }
 0x261   : > { %707 = vrot.lane.b32.xlu1 %v481_v14, %s1428_s16 }
 0x2b3   : > { %v652_v46 = vpop.xlane.xlu0 %651 }
 0x2b4   : > { %v656_v47 = vsub.f32 %v644_v40, %v652_v46 }
 0x2b6   : > { %v658_v48 = vmul.f32 1.442695, %v656_v47 }
 0x2b8   : > { %1385 = vpow2.f32 %v658_v48 }
 0x2bb   : > { %v655_v49 = vpop.xlane.xlu1 %654 }
 0x2bc   : > { %v657_v50 = vsub.f32 %v647_v42, %v655_v49 }
 0x2be   : > { %v1386_v51 = vpop.eup %1385  ;;  %v660_v52 = vmul.f32 1.442695, %v657_v50  ;;  %v606_v50 = vpop.f32.mrf.mxu2 }
 0x2bf   : > { %v662_v53 = vsel %vm252_vm2, %v1386_v51, 0.0 }
 0x2c0   : > { %1387 = vpow2.f32 %v660_v52  ;;  %663 = vadd.xlane.f32.xlu2 %v662_v53 }
 0x2c6   : > { %v1388_v54 = vpop.eup %1387  ;;  %v710_v55 = vpop.permute.xlu0 %709 }
 0x2c7   : > { %1320 = vmatpush.xpose.msk.msra.mxu3 %vm614_vm6, %v710_v55  ;;  %v665_v56 = vsel %vm252_vm2, %v1388_v54, 0.0 }
 0x2c8   : > { %666 = vadd.xlane.f32.xlu2 %v665_v56 }
 0x2ce   : > { %v706_v5 = vpop.permute.xlu0 %705 }
 0x2d3   : > { %v708_v57 = vpop.permute.xlu1 %707 }
 0x2d4   : > { %1321 = vmatpush.xpose.msk.msra.mxu3 %vm614_vm6, %v708_v57 }
 0x2e0   : > { %703 = vrot.lane.b32.xlu2 %v1622_v17, %s1428_s16  ;;  %v1375_v17 = vpack.i.bf16 %v1645_v44, %v603_v45 }
 0x333   : > { %v664_v59 = vpop.xlane.xlu2 %663 }
 0x334   : > { %1389 = vrcp.f32 %v664_v59 }
 0x33a   : > { %v1390_v62 = vpop.eup %1389 }
 0x33b   : > { %v667_v63 = vpop.xlane.xlu2 %666  ;;  %v670_v1 = vmul.f32 %v1390_v62, %v1386_v51  ;;  %v609_v51 = vpop.f32.mrf.mxu2 }
 0x33c   : > { %1391 = vrcp.f32 %v667_v63  ;;  %891 = vmatpush.msrb.mxu2 %v609_v51 }
 0x33d   : > { %1318 = vmatmul.msk.f32.vlgmr.msrb.gmra.mxu3 %vm252_vm2, %v670_v1 }
 0x33e   : > { %892 = vmatpush.msrb.mxu2 %v606_v50 }
 0x342   : > { %v1392_v2 = vpop.eup %1391 }
 0x343   : > { %v671_v3 = vmul.f32 %v1392_v2, %v1388_v54  ;;  %v704_v4 = vpop.permute.xlu2 %703 }
 0x345   : > { %1319 = vmatmul.msk.f32.gmra.mxu3 %vm252_vm2, %v671_v3 }
 0x34d   : > { %1322 = vmatmul.msk.f32.vlgmr.msra.gmra.mxu3 %vm614_vm6, %v704_v4 }
 0x355   : > { %1323 = vmatmul.msk.f32.gmra.mxu3 %vm614_vm6, %v706_v5 }
 0x3c0   : > { %v695_v11 = vpop.f32.mrf.mxu3 }
 0x3c1   : > { %701 = vst.msk [vmem:[#allocation4] sm:$0xff] %vm614_vm6, %v695_v11 }
 0x3c8   : > { %v698_v12 = vpop.f32.mrf.mxu3 }
 0x3c9   : > { %702 = vst.msk [vmem:[#allocation4 + $0x8] sm:$0xff] %vm614_vm6, %v698_v12 }
 0x3d0   : > { %v736_v13 = vpop.f32.mrf.mxu3 }
 0x3d1   : > { %v742_v14 = vsel %vm252_vm2, %v736_v13, -inf }
 0x3d2   : > { %743 = vmax.xlane.f32.xlu1 %v742_v14  ;;  %v1380_v14 = vpack.i.bf16 %v606_v50, %v609_v51  ;;  %v1021_v50 = vadd.s32 16, %v1544_v30  ;;  %v1022_v51 = vadd.s32 24, %v1544_v30 }
 0x3d8   : > { %v739_v15 = vpop.f32.mrf.mxu3 }
 0x3d9   : > { %v745_v16 = vsel %vm252_vm2, %v739_v15, -inf }
 0x3da   : > { %746 = vmax.xlane.f32.xlu0 %v745_v16 }
 0x3eb   : > { %1376 = vrot.lane.b32.xlu1 %v1375_v17, %s1428_s16 }
 0x3f3   : > { %915 = vrot.lane.b32.xlu1 %v487_v6, %s1428_s16 }
 0x3fb   : > { %913 = vrot.lane.b32.xlu1 %v813_v19, %s1428_s16 }
 0x445   : > { %v744_v20 = vpop.xlane.xlu1 %743 }
 0x446   : > { %v748_v21 = vsub.f32 %v736_v13, %v744_v20 }
 0x448   : > { %v750_v22 = vmul.f32 1.442695, %v748_v21 }
 0x44a   : > { %1393 = vpow2.f32 %v750_v22 }
 0x44d   : > { %v747_v23 = vpop.xlane.xlu0 %746 }
 0x44e   : > { %v749_v24 = vsub.f32 %v739_v15, %v747_v23 }
 0x450   : > { %v1394_v25 = vpop.eup %1393  ;;  %v752_v26 = vmul.f32 1.442695, %v749_v24 }
 0x451   : > { %v754_v27 = vsel %vm252_vm2, %v1394_v25, 0.0 }
 0x452   : > { %1395 = vpow2.f32 %v752_v26  ;;  %755 = vadd.xlane.f32.xlu2 %v754_v27 }
 0x458   : > { %v1396_v32 = vpop.eup %1395 }
 0x459   : > { %v757_v33 = vsel %vm252_vm2, %v1396_v32, 0.0 }
 0x45a   : > { %758 = vadd.xlane.f32.xlu0 %v757_v33  ;;  %850 = vmax.xlane.f32.xlu2 %v849_v31 }
 0x45d   : > { %v1377_v34 = vpop.permute.xlu1 %1376 }
 0x45e   : > { %v1378_v35 = vunpack.i.l.bf16 %v1377_v34  ;;  %v1379_v36 = vunpack.i.h.bf16 %v1377_v34 }
 0x460   : > { %792 = vmatpush.msrb.mxu3 %v1378_v35 }
 0x462   : > { %793 = vmatpush.msrb.mxu3 %v1379_v36 }
 0x464   : > { %1358 = vmatpush.xpose.msk.msra.mxu3 %vm614_vm6, %v1674_v8 }
 0x465   : > { %v916_v57 = vpop.permute.xlu1 %915 }
 0x468   : > { %1359 = vmatpush.xpose.msk.msra.mxu3 %vm614_vm6, %v487_v6 }
 0x46d   : > { %v914_v7 = vpop.permute.xlu1 %913 }
 0x4c5   : > { %v756_v39 = vpop.xlane.xlu2 %755 }
 0x4c6   : > { %1397 = vrcp.f32 %v756_v39 }
 0x4cc   : > { %v1398_v40 = vpop.eup %1397 }
 0x4cd   : > { %v762_v41 = vmul.f32 %v1398_v40, %v1394_v25  ;;  %v759_v42 = vpop.xlane.xlu0 %758  ;;  %v851_v43 = vpop.xlane.xlu2 %850 }
 0x4ce   : > { %1399 = vrcp.f32 %v759_v42  ;;  %v855_v44 = vsub.f32 %v843_v28, %v851_v43 }
 0x4cf   : > { %1324 = vmatmul.msk.f32.vlgmr.msrb.gmra.mxu3 %vm252_vm2, %v762_v41 }
 0x4d0   : > { %v857_v45 = vmul.f32 1.442695, %v855_v44 }
 0x4d2   : > { %1401 = vpow2.f32 %v857_v45  ;;  %v1024_v45 = vand.u32 127, %v248_v29 }
 0x4d4   : > { %v1400_v46 = vpop.eup %1399  ;;  %vm1025_vm11 = vcmp.eq.s32.totalorder %v1544_v30, %v1024_v45  ;;  %vm1027_vm13 = vcmp.eq.s32.totalorder %v1021_v50, %v1024_v45  ;;  %vm1028_vm14 = vcmp.eq.s32.totalorder %v1022_v51, %v1024_v45 }
 0x4d5   : > { %v763_v47 = vmul.f32 %v1400_v46, %v1396_v32  ;;  %v1031_v29 = vsel %vm1027_vm13, 1.0, %v1425_v0 }
 0x4d7   : > { %1325 = vmatmul.msk.f32.gmra.mxu3 %vm252_vm2, %v763_v47  ;;  %v1029_v47 = vsel %vm1025_vm11, 1.0, %v1425_v0 }
 0x4d8   : > { %v1402_v48 = vpop.eup %1401 }
 0x4d9   : > { %v861_v49 = vsel %vm252_vm2, %v1402_v48, 0.0 }
 0x4da   : > { %862 = vadd.xlane.f32.xlu2 %v861_v49 }
 0x4df   : > { %1329 = vmatmul.msk.f32.vlgmr.msra.gmra.mxu3 %vm614_vm6, %v813_v19 }
 0x4f2   : > { %917 = vrot.lane.b32.xlu2 %v1674_v8, %s1428_s16 }
 0x54d   : > { %v863_v52 = vpop.xlane.xlu2 %862 }
 0x54e   : > { %1403 = vrcp.f32 %v863_v52  ;;  %v1032_v52 = vsel %vm1028_vm14, 1.0, %v1425_v0 }
 0x552   : > { %v795_v53 = vpop.f32.mrf.mxu3 }
 0x554   : > { %v1404_v54 = vpop.eup %1403 }
 0x555   : > { %v918_v55 = vpop.permute.xlu2 %917  ;;  %v869_v56 = vmul.f32 %v1404_v54, %v1402_v48  ;;  %v1020_v48 = vadd.s32 8, %v1544_v30 }
 0x556   : > { %1332 = vmatpush.xpose.msk.msra.mxu2 %vm614_vm6, %v918_v55 }
 0x557   : > { %1330 = vmatmul.msk.f32.vlgmr.msrb.gmra.mxu2 %vm252_vm2, %v869_v56  ;;  %vm1026_vm12 = vcmp.eq.s32.totalorder %v1020_v48, %v1024_v45 }
 0x558   : > { %v1030_v49 = vsel %vm1026_vm12, 1.0, %v1425_v0 }
 0x55a   : > { %v798_v58 = vpop.f32.mrf.mxu3  ;;  %1333 = vmatpush.xpose.msk.msra.mxu2 %vm614_vm6, %v916_v57 }
 0x562   : > { %v846_v59 = vpop.f32.mrf.mxu3 }
 0x563   : > { %v852_v60 = vsel %vm252_vm2, %v846_v59, -inf }
 0x564   : > { %853 = vmax.xlane.f32.xlu0 %v852_v60 }
 0x5d7   : > { %v854_v61 = vpop.xlane.xlu0 %853 }
 0x5d8   : > { %v856_v62 = vsub.f32 %v846_v59, %v854_v61 }
 0x5da   : > { %v859_v63 = vmul.f32 1.442695, %v856_v62  ;;  %v894_v8 = vpop.f32.mrf.mxu2 }
 0x5dc   : > { %1405 = vpow2.f32 %v859_v63 }
 0x5e2   : > { %v1406_v1 = vpop.eup %1405 }
 0x5e3   : > { %v864_v2 = vsel %vm252_vm2, %v1406_v1, 0.0 }
 0x5e4   : > { %865 = vadd.xlane.f32.xlu0 %v864_v2 }
 0x5f8   : > { %911 = vrot.lane.b32.xlu0 %v1678_v10, %s1428_s16 }
 0x657   : > { %v866_v3 = vpop.xlane.xlu0 %865 }
 0x658   : > { %1407 = vrcp.f32 %v866_v3 }
 0x65e   : > { %v1408_v4 = vpop.eup %1407 }
 0x65f   : > { %v870_v5 = vmul.f32 %v1408_v4, %v1406_v1 }
 0x661   : > { %1331 = vmatmul.msk.f32.gmra.mxu2 %vm252_vm2, %v870_v5 }
 0x66a   : > { %v912_v6 = vpop.permute.xlu0 %911 }
 0x66b   : > { %1334 = vmatmul.msk.f32.vlgmr.msra.gmra.mxu2 %vm614_vm6, %v912_v6 }
 0x673   : > { %1335 = vmatmul.msk.f32.gmra.mxu2 %vm614_vm6, %v914_v7 }
 0x6e4   : > { %v897_v9 = vpop.f32.mrf.mxu2 }
 0x6ee   : > { %v944_v11 = vpop.f32.mrf.mxu2 }
 0x6ef   : > { %v950_v12 = vsel %vm252_vm2, %v944_v11, -inf }
 0x6f0   : > { %951 = vmax.xlane.f32.xlu1 %v950_v12 }
 0x6f6   : > { %v947_v13 = vpop.f32.mrf.mxu2 }
 0x6f7   : > { %v953_v10 = vsel %vm252_vm2, %v947_v13, -inf }
 0x6f8   : > { %954 = vmax.xlane.f32.xlu2 %v953_v10 }
 0x709   : > { %1381 = vrot.lane.b32.xlu1 %v1380_v14, %s1428_s16 }
 0x763   : > { %v952_v15 = vpop.xlane.xlu1 %951 }
 0x764   : > { %v956_v16 = vsub.f32 %v944_v11, %v952_v15  ;;  %v1344_v15 = vld [vmem:[%s1799_s3 + $0x60] sm:$0xff] }
 0x766   : > { %v958_v17 = vmul.f32 1.442695, %v956_v16 }
 0x768   : > { %1409 = vpow2.f32 %v958_v17  ;;  %v1345_v17 = vld [vmem:[%s1799_s3 + $0x68] sm:$0xff] }
 0x76b   : > { %v955_v18 = vpop.xlane.xlu2 %954 }
 0x76c   : > { %v957_v19 = vsub.f32 %v947_v13, %v955_v18  ;;  %v1346_v18 = vld [vmem:[%s1799_s3 + $0x70] sm:$0xff] }
 0x76e   : > { %v1410_v20 = vpop.eup %1409  ;;  %v960_v21 = vmul.f32 1.442695, %v957_v19  ;;  %v1347_v19 = vld [vmem:[%s1799_s3 + $0x78] sm:$0xff] }
 0x76f   : > { %v962_v22 = vsel %vm252_vm2, %v1410_v20, 0.0 }
 0x770   : > { %1411 = vpow2.f32 %v960_v21  ;;  %963 = vadd.xlane.f32.xlu0 %v962_v22 }
 0x776   : > { %v1412_v23 = vpop.eup %1411 }
 0x777   : > { %v965_v24 = vsel %vm252_vm2, %v1412_v23, 0.0 }
 0x778   : > { %966 = vadd.xlane.f32.xlu2 %v965_v24 }
 0x77b   : > { %v1382_v25 = vpop.permute.xlu1 %1381 }
 0x77c   : > { %v1383_v26 = vunpack.i.l.bf16 %v1382_v25  ;;  %v1384_v27 = vunpack.i.h.bf16 %v1382_v25 }
 0x77e   : > { %1000 = vmatpush.msrb.mxu3 %v1383_v26 }
 0x780   : > { %1001 = vmatpush.msrb.mxu3 %v1384_v27 }
 0x784   : > { %805 = vrot.lane.b32.xlu0 %v798_v58, %s1429_s6 }
 0x78c   : > { %803 = vrot.lane.b32.xlu0 %v795_v53, %s1429_s6 }
 0x790   : > { %904 = vrot.lane.b32.xlu2 %v897_v9, %s1430_s7 }
 0x7e3   : > { %v964_v28 = vpop.xlane.xlu0 %963 }
 0x7e4   : > { %1413 = vrcp.f32 %v964_v28 }
 0x7ea   : > { %v1414_v31 = vpop.eup %1413 }
 0x7eb   : > { %v970_v32 = vmul.f32 %v1414_v31, %v1410_v20  ;;  %v967_v33 = vpop.xlane.xlu2 %966 }
 0x7ec   : > { %1415 = vrcp.f32 %v967_v33 }
 0x7ed   : > { %1336 = vmatmul.msk.f32.vlgmr.msrb.gmra.mxu3 %vm252_vm2, %v970_v32 }
 0x7f2   : > { %v1416_v34 = vpop.eup %1415 }
 0x7f3   : > { %v971_v35 = vmul.f32 %v1416_v34, %v1412_v23  ;;  %v905_v37 = vpop.permute.xlu2 %904 }
 0x7f5   : > { %1337 = vmatmul.msk.f32.gmra.mxu3 %vm252_vm2, %v971_v35 }
 0x7f6   : > { %v806_v36 = vpop.permute.xlu0 %805 }
 0x7f7   : > { %811 = vst.msk [vmem:[#allocation4 + $0x8] sm:$0xff] %vm809_vm7, %v806_v36 }
 0x7f8   : > { %910 = vst.msk [vmem:[#allocation4 + $0x8] sm:$0xff] %vm908_vm8, %v905_v37 }
 0x7fe   : > { %v804_v38 = vpop.permute.xlu0 %803 }
 0x7ff   : > { %810 = vst.msk [vmem:[#allocation4] sm:$0xff] %vm809_vm7, %v804_v38 }
 0x870   : > { %v1003_v39 = vpop.f32.mrf.mxu3 }
 0x871   : > { %1011 = vrot.lane.b32.xlu0 %v1003_v39, %s1431_s8 }
 0x878   : > { %v1006_v40 = vpop.f32.mrf.mxu3 }
 0x879   : > { %1013 = vrot.lane.b32.xlu1 %v1006_v40, %s1431_s8 }
 0x881   : > { %902 = vrot.lane.b32.xlu1 %v894_v8, %s1430_s7 }
 0x8e3   : > { %v1012_v44 = vpop.permute.xlu0 %1011 }
 0x8eb   : > { %v1014_v41 = vpop.permute.xlu1 %1013 }
 0x8ec   : > { %1019 = vst.msk [vmem:[#allocation4 + $0x8] sm:$0xff] %vm1017_vm9, %v1014_v41 }
 0x8f3   : > { %v903_v42 = vpop.permute.xlu1 %902  ;;  %v1034_v43 = vld [vmem:[#allocation4 + $0x8] sm:$0xff] }
 0x8f4   : > { %909 = vst.msk [vmem:[#allocation4] sm:$0xff] %vm908_vm8, %v903_v42  ;;  %1338 = vmatpush.xpose.msk.msra.mxu0 %vm1035_vm10, %v1034_v43 }
 0x8f5   : > { %1018 = vst.msk [vmem:[#allocation4] sm:$0xff] %vm1017_vm9, %v1012_v44 }
 0x8fc   : > { %v1033_v46 = vld [vmem:[#allocation4] sm:$0xff] }
 0x8fd   : > { %1339 = vmatpush.xpose.msk.msra.mxu0 %vm1035_vm10, %v1033_v46 }
 0x900   : > { %1340 = vmatmul.msk.f32.vlgmr.msra.gmra.mxu0 %vm1035_vm10, %v1029_v47 }
 0x908   : > { %1341 = vmatmul.msk.f32.gmra.mxu0 %vm1035_vm10, %v1030_v49 }
 0x910   : > { %1342 = vmatmul.msk.f32.gmra.mxu0 %vm1035_vm10, %v1031_v29 }
 0x918   : > { %1343 = vmatmul.msk.f32.gmra.mxu0 %vm1035_vm10, %v1032_v52 }
 0x97d   : > { %v1071_v53 = vpop.f32.mrf.mxu0 }
 0x97e   : > { %1111 = vst.msk [vmem:[#allocation3 + $0x20] sm:$0xff] %vm252_vm2, %v1071_v53 }
 0x985   : > { %v1074_v54 = vpop.f32.mrf.mxu0  ;;  %v1148_v12 = vld [vmem:[#allocation3 + $0x20] sm:$0xff] }
 0x986   : > { %1112 = vst.msk [vmem:[#allocation3 + $0x28] sm:$0xff] %vm252_vm2, %v1074_v54  ;;  %1089 = vrot.lane.b32.xlu0 %v1074_v54, %s1426_s21 }
 0x98d   : > { %v1077_v55 = vpop.f32.mrf.mxu0  ;;  %v1149_v11 = vld [vmem:[#allocation3 + $0x28] sm:$0xff] }
 0x98e   : > { %1113 = vst.msk [vmem:[#allocation3 + $0x30] sm:$0xff] %vm252_vm2, %v1077_v55  ;;  %1091 = vrot.lane.b32.xlu1 %v1077_v55, %s1426_s21 }
 0x995   : > { %v1080_v30 = vpop.f32.mrf.mxu0  ;;  %v1150_v9 = vld [vmem:[#allocation3 + $0x30] sm:$0xff] }
 0x996   : > { %1114 = vst.msk [vmem:[#allocation3 + $0x38] sm:$0xff] %vm252_vm2, %v1080_v30  ;;  %1093 = vrot.lane.b32.xlu2 %v1080_v30, %s1426_s21 }
 0x99d   : > { %v1151_v8 = vld [vmem:[#allocation3 + $0x38] sm:$0xff] }
 0x99e   : > { %1087 = vrot.lane.b32.xlu2 %v1071_v53, %s1426_s21 }
 0x9f0   : > { %v1094_v0 = vpop.permute.xlu2 %1093 }
 0x9f1   : > { %1102 = vst.msk [vmem:[#allocation2 + $0x18] sm:$0xff] %vm274_vm3, %v1094_v0 }
 0x9f8   : > { %v1090_v56 = vpop.permute.xlu0 %1089  ;;  %v1088_v57 = vpop.permute.xlu2 %1087  ;;  %v1118_v58 = vld [vmem:[#allocation2 + $0x18] sm:$0xff] }
 0x9f9   : > { %1100 = vst.msk [vmem:[#allocation2 + $0x8] sm:$0xff] %vm274_vm3, %v1090_v56  ;;  %1129 = vrot.lane.b32.xlu1 %v1118_v58, %s1427_s25 }
 0x9fa   : > { %1099 = vst.msk [vmem:[#allocation2] sm:$0xff] %vm274_vm3, %v1088_v57 }
 0x9fb   : > { %1110 = vst.msk [vmem:[#allocation3 + $0x18] sm:$0xff] %vm252_vm2, %v1118_v58 }
 0xa00   : > { %v1092_v59 = vpop.permute.xlu1 %1091  ;;  %v1116_v60 = vld [vmem:[#allocation2 + $0x8] sm:$0xff] }
 0xa01   : > { %1101 = vst.msk [vmem:[#allocation2 + $0x10] sm:$0xff] %vm274_vm3, %v1092_v59  ;;  %1125 = vrot.lane.b32.xlu2 %v1116_v60, %s1427_s25  ;;  %v1115_v61 = vld [vmem:[#allocation2] sm:$0xff] }
 0xa02   : > { %1123 = vrot.lane.b32.xlu1 %v1115_v61, %s1427_s25  ;;  %1108 = vst.msk [vmem:[#allocation3 + $0x8] sm:$0xff] %vm252_vm2, %v1116_v60  ;;  %v1147_v13 = vld [vmem:[#allocation3 + $0x18] sm:$0xff] }
 0xa03   : > { %1107 = vst.msk [vmem:[#allocation3] sm:$0xff] %vm252_vm2, %v1115_v61 }
 0xa08   : > { %v1117_v62 = vld [vmem:[#allocation2 + $0x10] sm:$0xff] }
 0xa09   : > { %1127 = vrot.lane.b32.xlu0 %v1117_v62, %s1427_s25  ;;  %1109 = vst.msk [vmem:[#allocation3 + $0x10] sm:$0xff] %vm252_vm2, %v1117_v62  ;;  %v1145_v14 = vld [vmem:[#allocation3 + $0x8] sm:$0xff] }
 0xa0a   : > { %v1144_v16 = vld [vmem:[#allocation3] sm:$0xff] }
 0xa10   : > { %v1146_v10 = vld [vmem:[#allocation3 + $0x10] sm:$0xff] }
 0xa5b   : > { %v1126_v63 = vpop.permute.xlu2 %1125 }
 0xa5c   : > { %1136 = vst.msk [vmem:[#allocation3 + $0x48] sm:$0xff] %vm252_vm2, %v1126_v63 }
 0xa63   : > { %v1153_v6 = vld [vmem:[#allocation3 + $0x48] sm:$0xff] }
 0xa6b   : > { %v1130_v1 = vpop.permute.xlu1 %1129 }
 0xa6c   : > { %1138 = vst.msk [vmem:[#allocation3 + $0x58] sm:$0xff] %vm252_vm2, %v1130_v1 }
 0xa73   : > { %v1155_v2 = vld [vmem:[#allocation3 + $0x58] sm:$0xff] }
 0xa74   : > { %v1124_v3 = vpop.permute.xlu1 %1123  ;;  %1173 = vmatpush.msrb.mxu1 %v1155_v2 }
 0xa75   : > { %1135 = vst.msk [vmem:[#allocation3 + $0x40] sm:$0xff] %vm252_vm2, %v1124_v3 }
 0xa7b   : > { %v1128_v4 = vpop.permute.xlu0 %1127 }
 0xa7c   : > { %1137 = vst.msk [vmem:[#allocation3 + $0x50] sm:$0xff] %vm252_vm2, %v1128_v4  ;;  %v1152_v7 = vld [vmem:[#allocation3 + $0x40] sm:$0xff] }
 0xa83   : > { %v1154_v5 = vld [vmem:[#allocation3 + $0x50] sm:$0xff] }
 0xa84   : > { %1174 = vmatpush.msrb.mxu1 %v1154_v5 }
 0xa86   : > { %1175 = vmatpush.msrb.mxu1 %v1153_v6 }
 0xa88   : > { %1176 = vmatpush.msrb.mxu1 %v1152_v7 }
 0xa8a   : > { %1177 = vmatpush.msrb.mxu1 %v1151_v8 }
 0xa8c   : > { %1178 = vmatpush.msrb.mxu1 %v1150_v9 }
 0xa8e   : > { %1179 = vmatpush.msrb.mxu1 %v1149_v11 }
 0xa90   : > { %1180 = vmatpush.msrb.mxu1 %v1148_v12 }
 0xa92   : > { %1181 = vmatpush.msrb.mxu1 %v1147_v13 }
 0xa94   : > { %1182 = vmatpush.msrb.mxu1 %v1146_v10 }
 0xa96   : > { %1183 = vmatpush.msrb.mxu1 %v1145_v14 }
 0xa98   : > { %1184 = vmatpush.msrb.mxu1 %v1144_v16 }
 0xa99   : > { %1348 = vmatmul.msk.f32.vlgmr.msrb.gmra.mxu1 %vm332_vm5, %v1344_v15 }
 0xaa1   : > { %1349 = vmatmul.msk.f32.gmra.mxu1 %vm332_vm5, %v1345_v17 }
 0xaa9   : > { %1350 = vmatmul.msk.f32.gmra.mxu1 %vm332_vm5, %v1346_v18 }
 0xab1   : > { %1351 = vmatmul.msk.f32.gmra.mxu1 %vm332_vm5, %v1347_v19 }
 0xb16   : > { %v1186_v20 = vpop.f32.mrf.mxu1 }
 0xb17   : > { %1198 = vst.msk [vmem:[%s237_s19] sm:$0xff] %vm252_vm2, %v1186_v20 }
 0xb1e   : > { %v1189_v21 = vpop.f32.mrf.mxu1 }
 0xb1f   : > { %1199 = vst.msk [vmem:[%s237_s19 + $0x8] sm:$0xff] %vm252_vm2, %v1189_v21 }
 0xb26   : > { %v1192_v22 = vpop.f32.mrf.mxu1 }
 0xb27   : > { %1200 = vst.msk [vmem:[%s237_s19 + $0x10] sm:$0xff] %vm252_vm2, %v1192_v22 }
 0xb2e   : > { %v1195_v23 = vpop.f32.mrf.mxu1 }
 0xb2f   : > { %1201 = vst.msk [vmem:[%s237_s19 + $0x18] sm:$0xff] %vm252_vm2, %v1195_v23 }
 0xb30 PF: > { %s14_s15 = sadd.s32 1, %s1423_s15  }
 0xb31   : > { %p11_p4 = scmp.ge.s32.totalorder %s14_s15, 4  }
 0xb33   :  { %13 = sbr.rel (!%p11_p4) target bundleno = 1 (0x1), region = 75 }

</bundles_post_ra>
